<compile_context>
chip_gen: v5e
topology: v5e:2x2
jax: 0.10.0
libtpu: 0.0.40
codegen_flags: <defaults>
</compile_context>

<pallas_src>
import functools
import math

import jax
import jax.numpy as jnp
from jax.experimental import pallas as pl
from jax.experimental.pallas import tpu as pltpu


def _softplus(v):
    # numerically stable softplus built only from ops with guaranteed lowering
    return jnp.maximum(v, 0.0) + jnp.log(1.0 + jnp.exp(-jnp.abs(v)))


def _sigmoid(v):
    return 1.0 / (1.0 + jnp.exp(-v))


# ----------------------------------------------------------------------------
# Fused Pallas kernel: encoder trunk + encode_y + encode_z + decode
# ----------------------------------------------------------------------------
def _vae_fused_kernel(*refs, num_blocks, num_heads, temperature, hard, out_pad):
    x_ref, adj_ref, gum_ref, eps_ref = refs[:4]
    blk_refs = refs[4:4 + 4 * num_blocks]
    wx_ref, bx_ref, wy_ref, by_ref = refs[4 + 4 * num_blocks:
                                          4 + 4 * num_blocks + 4]
    out_ref = refs[-1]

    bb, n, d0 = x_ref.shape            # bb = batch items handled per grid step
    rows = bb * n
    x = x_ref[...].reshape(rows, d0)

    # additive adjacency mask, computed once, reused by all blocks / heads
    neg = jnp.where(adj_ref[...] > 0, 0.0, -1e9).astype(jnp.float32)  # (bb,n,n)

    # ---------------- encoder trunk: adjacency-masked MHA blocks ------------
    for blk in range(num_blocks):
        wqkv_ref, bqkv_ref, wo_ref, bo_ref = blk_refs[4 * blk:4 * blk + 4]
        dout = wo_ref.shape[-1]
        dh = dout // num_heads
        scale = 1.0 / math.sqrt(dh)

        # ONE fused projection matmul: (rows, din) x (din, 3*dout)
        qkv = jnp.dot(x, wqkv_ref[...],
                      preferred_element_type=jnp.float32) + bqkv_ref[...]
        wo = wo_ref[...]
        bo_full = jnp.zeros((n, dout), jnp.float32) + bo_ref[...]   # hoisted

        outs = []
        for b in range(bb):
            qkv_b = qkv[b * n:(b + 1) * n]                          # (n, 3*dout)
            # K transposed once per (block, batch item)
            kT = qkv_b[:, dout:2 * dout].T                          # (dout, n)
            neg_b = neg[b]
            acc = bo_full
            for h in range(num_heads):
                q_h = qkv_b[:, h * dh:(h + 1) * dh]                 # (n, dh)
                v_h = qkv_b[:, 2 * dout + h * dh:2 * dout + (h + 1) * dh]
                kT_h = kT[h * dh:(h + 1) * dh, :]                   # (dh, n)
                s = jnp.dot(q_h, kT_h,
                            preferred_element_type=jnp.float32) * scale + neg_b
                s = s - jnp.max(s, axis=-1, keepdims=True)
                p = jnp.exp(s)
                p = p * pl.reciprocal(jnp.sum(p, axis=-1, keepdims=True),
                                      approx=True)
                o_h = jnp.dot(p, v_h, preferred_element_type=jnp.float32)
                # MXU accumulates the output projection over heads (no concat)
                acc = acc + jnp.dot(o_h, wo[h * dh:(h + 1) * dh, :],
                                    preferred_element_type=jnp.float32)
            outs.append(acc)
        x = jax.nn.relu(outs[0] if bb == 1 else jnp.concatenate(outs, axis=0))

    latent = x.shape[-1]
    y_dim = wy_ref.shape[0]

    # ---------------- fused epilogue: encode_y / encode_z / decode ----------
    # x-path fused linear: [logits | mu_x | var_x]
    xz = jnp.dot(x, wx_ref[...], preferred_element_type=jnp.float32) + bx_ref[...]
    logits = xz[:, :y_dim]
    mu_x = xz[:, y_dim:y_dim + latent]
    var_x = xz[:, y_dim + latent:y_dim + 2 * latent]

    # softmax(logits) -> prob_cat (exact division: tiny, user-facing)
    lm = logits - jnp.max(logits, axis=-1, keepdims=True)
    pe = jnp.exp(lm)
    prob = pe / jnp.sum(pe, axis=-1, keepdims=True)

    # gumbel-softmax -> categorical y
    g = gum_ref[...].reshape(rows, y_dim)
    gl = (logits + g) * (1.0 / temperature)
    gl = gl - jnp.max(gl, axis=-1, keepdims=True)
    ge = jnp.exp(gl)
    y_soft = ge / jnp.sum(ge, axis=-1, keepdims=True)
    if hard:
        # TODO(synk): ties give multi-hot here vs torch argmax one-hot
        # (forward value of the straight-through estimator).
        y = (y_soft >= jnp.max(y_soft, axis=-1, keepdims=True)).astype(jnp.float32)
    else:
        y = y_soft

    # y-path fused linear: [mu_y | var_y | y_mu | y_var] -> 4*latent lanes
    yz = jnp.dot(y, wy_ref[...], preferred_element_type=jnp.float32) + by_ref[...]
    mu = mu_x + yz[:, :latent]
    var = _softplus(var_x + yz[:, latent:2 * latent])
    y_mu = yz[:, 2 * latent:3 * latent]
    y_var = _softplus(yz[:, 3 * latent:4 * latent])

    eps = eps_ref[...].reshape(rows, latent)
    z = mu + jnp.sqrt(var) * eps

    # decode: per-batch sigmoid(z z^T)
    recons = []
    for b in range(bb):
        z_b = z[b * n:(b + 1) * n]
        recons.append(_sigmoid(jnp.dot(z_b, z_b.T,
                                       preferred_element_type=jnp.float32)))
    recon = recons[0] if bb == 1 else jnp.concatenate(recons, axis=0)

    # single 128-aligned lane-dense output slab.  Order MUST stay in sync with
    # the wrapper's names_widths slicing: five 32-wide outputs first.
    pieces = [mu, var, z, y_mu, y_var, logits, prob, y, recon]
    if out_pad > 0:
        pieces.append(jnp.zeros((rows, out_pad), jnp.float32))
    slab = jnp.concatenate(pieces, axis=-1)
    out_ref[...] = slab.reshape(bb, n, slab.shape[-1])


# ----------------------------------------------------------------------------
# Parameter initialization (Xavier-normal weights / zero bias,
# mirroring VAE.weight_initialization)
# ----------------------------------------------------------------------------
def _xavier_normal(key, shape):
    fan_in, fan_out = shape
    std = math.sqrt(2.0 / (fan_in + fan_out))
    return std * jax.random.normal(key, shape, jnp.float32)


def init_vae_params(key, in_channels, out_channels, num_heads, y_dim, latent_dim):
    assert out_channels[-1] == latent_dim
    assert len(in_channels) == len(out_channels)
    params = {"blocks": []}
    for din, dout in zip(in_channels, out_channels):
        key, *ks = jax.random.split(key, 5)
        params["blocks"].append({
            "wq": _xavier_normal(ks[0], (din, dout)), "bq": jnp.zeros((1, dout), jnp.float32),
            "wk": _xavier_normal(ks[1], (din, dout)), "bk": jnp.zeros((1, dout), jnp.float32),
            "wv": _xavier_normal(ks[2], (din, dout)), "bv": jnp.zeros((1, dout), jnp.float32),
            "wo": _xavier_normal(ks[3], (dout, dout)), "bo": jnp.zeros((1, dout), jnp.float32),
        })
    key, k1, k2, k3, k4, k5 = jax.random.split(key, 6)
    params["w_logits"] = _xavier_normal(k1, (latent_dim, y_dim))
    params["b_logits"] = jnp.zeros((1, y_dim), jnp.float32)
    params["w_mu"] = _xavier_normal(k2, (latent_dim + y_dim, latent_dim))
    params["b_mu"] = jnp.zeros((1, latent_dim), jnp.float32)
    params["w_var"] = _xavier_normal(k3, (latent_dim + y_dim, latent_dim))
    params["b_var"] = jnp.zeros((1, latent_dim), jnp.float32)
    params["w_ymu"] = _xavier_normal(k4, (y_dim, latent_dim))
    params["b_ymu"] = jnp.zeros((1, latent_dim), jnp.float32)
    params["w_yvar"] = _xavier_normal(k5, (y_dim, latent_dim))
    params["b_yvar"] = jnp.zeros((1, latent_dim), jnp.float32)
    return params


def _single_tensorcore_device():
    """True for chips with one TensorCore per device (v5e / v6e / *-lite)."""
    try:
        kind = jax.devices()[0].device_kind.lower()
    except Exception:
        return False
    return any(tag in kind for tag in ("lite", "v5e", "v6e"))


# ----------------------------------------------------------------------------
# VAE forward (single pallas_call)
# ----------------------------------------------------------------------------
def vae_forward(params, h, adj_matrix, rng, *, num_heads, temperature=1.0,
                hard=0, fold_batch=None):
    B, N, D0 = h.shape
    latent = params["w_mu"].shape[1]
    y_dim = params["w_logits"].shape[1]
    num_blocks = len(params["blocks"])

    if fold_batch is None:
        # single-TC chips: fold the whole batch into one grid step (removes
        # per-step overhead, doubles sublane occupancy).  Dual-TC chips
        # (v4/v5p/v7x): keep grid=(B,) "parallel" so both cores split the batch.
        fold_batch = _single_tensorcore_device() or B == 1
    bb = B if fold_batch else 1          # batch items per grid step
    steps = B // bb

    # sampling noise generated outside the kernel and passed in as inputs
    k_g, k_n = jax.random.split(rng)
    u = jax.random.uniform(k_g, (B, N, y_dim), jnp.float32,
                           minval=1e-6, maxval=1.0 - 1e-6)
    gumbel = -jnp.log(-jnp.log(u))
    eps = jax.random.normal(k_n, (B, N, latent), jnp.float32)

    # per-block weights: fused (Din, 3*Dout) QKV matrix + output projection
    block_inputs = []
    for blk in params["blocks"]:
        wqkv = jnp.concatenate([blk["wq"], blk["wk"], blk["wv"]], axis=1)
        bqkv = jnp.concatenate([blk["bq"], blk["bk"], blk["bv"]], axis=1)
        block_inputs += [wqkv, bqkv, blk["wo"], blk["bo"]]

    # fused epilogue weights:
    #   x-path (latent, y_dim + 2*latent): [logits | mu_x | var_x]
    #   y-path (y_dim, 4*latent):          [mu_y | var_y | y_mu | y_var]
    wx = jnp.concatenate([params["w_logits"],
                          params["w_mu"][:latent],
                          params["w_var"][:latent]], axis=1)
    bx = jnp.concatenate([params["b_logits"], params["b_mu"],
                          params["b_var"]], axis=1)
    wy = jnp.concatenate([params["w_mu"][latent:],
                          params["w_var"][latent:],
                          params["w_ymu"], params["w_yvar"]], axis=1)
    by = jnp.concatenate([jnp.zeros((1, latent), jnp.float32),
                          jnp.zeros((1, latent), jnp.float32),
                          params["b_ymu"], params["b_yvar"]], axis=1)
    epi_inputs = [wx, bx, wy, by]

    W = 5 * latent + 3 * y_dim + N            # raw slab width
    W_pad = ((W + 127) // 128) * 128          # 128-aligned -> dense vst
    out_pad = W_pad - W

    def _batch_spec(shape):
        return pl.BlockSpec(shape, lambda i: (i, 0, 0))

    def _const_spec(shape):
        nd = len(shape)
        return pl.BlockSpec(shape, lambda i, _nd=nd: (0,) * _nd)

    in_specs = ([_batch_spec((bb, N, D0)), _batch_spec((bb, N, N)),
                 _batch_spec((bb, N, y_dim)), _batch_spec((bb, N, latent))]
                + [_const_spec(a.shape) for a in block_inputs + epi_inputs])

    kernel = functools.partial(_vae_fused_kernel, num_blocks=num_blocks,
                               num_heads=num_heads, temperature=temperature,
                               hard=hard, out_pad=out_pad)
    slab = pl.pallas_call(
        kernel,
        out_shape=jax.ShapeDtypeStruct((B, N, W_pad), jnp.float32),
        grid=(steps,),
        in_specs=in_specs,
        out_specs=pl.BlockSpec((bb, N, W_pad), lambda i: (i, 0, 0)),
        compiler_params=pltpu.CompilerParams(dimension_semantics=("parallel",)),
    )(h, adj_matrix, gumbel, eps, *block_inputs, *epi_inputs)

    # slice the padded lane-dense slab back into named outputs (order MUST
    # match the kernel's concat order; trailing pad lanes are dropped)
    names_widths = [("mean", latent), ("var", latent), ("gaussian", latent),
                    ("y_mean", latent), ("y_var", latent),
                    ("logits", y_dim), ("prob_cat", y_dim),
                    ("categorical", y_dim), ("reconstruct_graph", N)]
    out, off = {}, 0
    for name, w in names_widths:
        out[name] = slab[..., off:off + w]
        off += w
    return out


# ----------------------------------------------------------------------------
# Main
# ----------------------------------------------------------------------------
if __name__ == "__main__":
    B, N = 2, 8
    encoder_in_channels = [32, 64, 64]
    encoder_out_channels = [64, 64, 32]
    num_heads = 4
    y_dim = 4
    latent_dim = 32

    root = jax.random.PRNGKey(0)
    k_param, k_h, k_adj, k_fwd = jax.random.split(root, 4)

    params = init_vae_params(k_param, encoder_in_channels, encoder_out_channels,
                             num_heads, y_dim, latent_dim)

    h = jax.random.normal(k_h, (B, N, encoder_in_channels[0]), jnp.float32)
    a = (jax.random.uniform(k_adj, (B, N, N)) > 0.5).astype(jnp.float32)
    adj_matrix = jnp.clip(a + jnp.transpose(a, (0, 2, 1)) + jnp.eye(N)[None], 0.0, 1.0)

    fwd = jax.jit(functools.partial(vae_forward, num_heads=num_heads,
                                    temperature=1.0, hard=0))
    out = fwd(params, h, adj_matrix, k_fwd)
    jax.block_until_ready(out["reconstruct_graph"])

    assert out["mean"].shape == (B, N, latent_dim)
    assert out["var"].shape == (B, N, latent_dim)
    assert out["gaussian"].shape == (B, N, latent_dim)
    assert out["logits"].shape == (B, N, y_dim)
    assert out["prob_cat"].shape == (B, N, y_dim)
    assert out["categorical"].shape == (B, N, y_dim)
    assert out["y_mean"].shape == (B, N, latent_dim)
    assert out["y_var"].shape == (B, N, latent_dim)
    assert out["reconstruct_graph"].shape == (B, N, N)

    print("KERNEL_OK")
</pallas_src>

<mosaic_0001>
module attributes {stable_mosaic.version = 11 : i64} {
  func.func @_vae_fused_kernel(%arg0: i32, %arg1: memref<1x8x32xf32, #tpu.memory_space<vmem>>, %arg2: memref<1x8x8xf32, #tpu.memory_space<vmem>>, %arg3: memref<1x8x4xf32, #tpu.memory_space<vmem>>, %arg4: memref<1x8x32xf32, #tpu.memory_space<vmem>>, %arg5: memref<32x192xf32, #tpu.memory_space<vmem>>, %arg6: memref<1x192xf32, #tpu.memory_space<vmem>>, %arg7: memref<64x64xf32, #tpu.memory_space<vmem>>, %arg8: memref<1x64xf32, #tpu.memory_space<vmem>>, %arg9: memref<64x192xf32, #tpu.memory_space<vmem>>, %arg10: memref<1x192xf32, #tpu.memory_space<vmem>>, %arg11: memref<64x64xf32, #tpu.memory_space<vmem>>, %arg12: memref<1x64xf32, #tpu.memory_space<vmem>>, %arg13: memref<64x96xf32, #tpu.memory_space<vmem>>, %arg14: memref<1x96xf32, #tpu.memory_space<vmem>>, %arg15: memref<32x32xf32, #tpu.memory_space<vmem>>, %arg16: memref<1x32xf32, #tpu.memory_space<vmem>>, %arg17: memref<32x68xf32, #tpu.memory_space<vmem>>, %arg18: memref<1x68xf32, #tpu.memory_space<vmem>>, %arg19: memref<4x128xf32, #tpu.memory_space<vmem>>, %arg20: memref<1x128xf32, #tpu.memory_space<vmem>>, %arg21: memref<1x8x256xf32, #tpu.memory_space<vmem>>) attributes {dimension_semantics = [#tpu.dimension_semantics<parallel>], iteration_bounds = array<i64: 2>, scalar_prefetch = 0 : i64, scratch_operands = 0 : i64, tpu.core_type = #tpu.core_type<tc>, window_params = [{transform_indices = @transform_0, window_bounds = array<i64: 1, 8, 32>}, {transform_indices = @transform_1, window_bounds = array<i64: 1, 8, 8>}, {transform_indices = @transform_2, window_bounds = array<i64: 1, 8, 4>}, {transform_indices = @transform_3, window_bounds = array<i64: 1, 8, 32>}, {pipeline_mode = #tpu.pipeline_mode<synchronous>, transform_indices = @transform_4, window_bounds = array<i64: 32, 192>}, {pipeline_mode = #tpu.pipeline_mode<synchronous>, transform_indices = @transform_5, window_bounds = array<i64: 1, 192>}, {pipeline_mode = #tpu.pipeline_mode<synchronous>, transform_indices = @transform_6, window_bounds = array<i64: 64, 64>}, {pipeline_mode = #tpu.pipeline_mode<synchronous>, transform_indices = @transform_7, window_bounds = array<i64: 1, 64>}, {pipeline_mode = #tpu.pipeline_mode<synchronous>, transform_indices = @transform_8, window_bounds = array<i64: 64, 192>}, {pipeline_mode = #tpu.pipeline_mode<synchronous>, transform_indices = @transform_9, window_bounds = array<i64: 1, 192>}, {pipeline_mode = #tpu.pipeline_mode<synchronous>, transform_indices = @transform_10, window_bounds = array<i64: 64, 64>}, {pipeline_mode = #tpu.pipeline_mode<synchronous>, transform_indices = @transform_11, window_bounds = array<i64: 1, 64>}, {pipeline_mode = #tpu.pipeline_mode<synchronous>, transform_indices = @transform_12, window_bounds = array<i64: 64, 96>}, {pipeline_mode = #tpu.pipeline_mode<synchronous>, transform_indices = @transform_13, window_bounds = array<i64: 1, 96>}, {pipeline_mode = #tpu.pipeline_mode<synchronous>, transform_indices = @transform_14, window_bounds = array<i64: 32, 32>}, {pipeline_mode = #tpu.pipeline_mode<synchronous>, transform_indices = @transform_15, window_bounds = array<i64: 1, 32>}, {pipeline_mode = #tpu.pipeline_mode<synchronous>, transform_indices = @transform_16, window_bounds = array<i64: 32, 68>}, {pipeline_mode = #tpu.pipeline_mode<synchronous>, transform_indices = @transform_17, window_bounds = array<i64: 1, 68>}, {pipeline_mode = #tpu.pipeline_mode<synchronous>, transform_indices = @transform_18, window_bounds = array<i64: 4, 128>}, {pipeline_mode = #tpu.pipeline_mode<synchronous>, transform_indices = @transform_19, window_bounds = array<i64: 1, 128>}, {transform_indices = @transform_20, window_bounds = array<i64: 1, 8, 256>}]} {
    %c0 = arith.constant 0 : index
    %c0_0 = arith.constant 0 : index
    %c0_1 = arith.constant 0 : index
    %0 = vector.load %arg1[%c0, %c0_0, %c0_1] : memref<1x8x32xf32, #tpu.memory_space<vmem>>, vector<1x8x32xf32>
    %1 = vector.shape_cast %0 : vector<1x8x32xf32> to vector<8x32xf32>
    %c0_2 = arith.constant 0 : index
    %c0_3 = arith.constant 0 : index
    %c0_4 = arith.constant 0 : index
    %2 = vector.load %arg2[%c0_2, %c0_3, %c0_4] : memref<1x8x8xf32, #tpu.memory_space<vmem>>, vector<1x8x8xf32>
    %cst = arith.constant 0.000000e+00 : f32
    %3 = vector.broadcast %cst : f32 to vector<1x8x8xf32>
    %4 = arith.cmpf ogt, %2, %3 : vector<1x8x8xf32>
    %cst_5 = arith.constant 0.000000e+00 : f32
    %cst_6 = arith.constant -1.000000e+09 : f32
    %5 = vector.broadcast %cst_5 : f32 to vector<1x8x8xf32>
    %6 = vector.broadcast %cst_6 : f32 to vector<1x8x8xf32>
    %7 = arith.select %4, %5, %6 : vector<1x8x8xi1>, vector<1x8x8xf32>
    %c0_7 = arith.constant 0 : index
    %c0_8 = arith.constant 0 : index
    %8 = vector.load %arg5[%c0_7, %c0_8] : memref<32x192xf32, #tpu.memory_space<vmem>>, vector<32x192xf32>
    %cst_9 = arith.constant dense<0.000000e+00> : vector<8x192xf32>
    %9 = tpu.matmul %1, %8, %cst_9 {dimension_numbers = #tpu.dot_dimension_numbers<[1], [0], [0], [1], [0, 0, 1, 1], [], []>} : vector<8x32xf32>, vector<32x192xf32>, vector<8x192xf32> -> vector<8x192xf32>
    %c0_10 = arith.constant 0 : index
    %c0_11 = arith.constant 0 : index
    %10 = vector.load %arg6[%c0_10, %c0_11] : memref<1x192xf32, #tpu.memory_space<vmem>>, vector<1x192xf32>
    %11 = vector.broadcast %10 : vector<1x192xf32> to vector<8x192xf32>
    %12 = arith.addf %9, %11 : vector<8x192xf32>
    %c0_12 = arith.constant 0 : index
    %c0_13 = arith.constant 0 : index
    %13 = vector.load %arg7[%c0_12, %c0_13] : memref<64x64xf32, #tpu.memory_space<vmem>>, vector<64x64xf32>
    %cst_14 = arith.constant 0.000000e+00 : f32
    %14 = vector.broadcast %cst_14 : f32 to vector<8x64xf32>
    %c0_15 = arith.constant 0 : index
    %c0_16 = arith.constant 0 : index
    %15 = vector.load %arg8[%c0_15, %c0_16] : memref<1x64xf32, #tpu.memory_space<vmem>>, vector<1x64xf32>
    %16 = vector.broadcast %15 : vector<1x64xf32> to vector<8x64xf32>
    %17 = arith.addf %14, %16 : vector<8x64xf32>
    %18 = vector.extract_strided_slice %12 {offsets = [0, 64], sizes = [8, 64], strides = [1, 1]} : vector<8x192xf32> to vector<8x64xf32>
    %19 = tpu.transpose %18, [1, 0] : vector<8x64xf32> -> vector<64x8xf32>
    %20 = vector.shape_cast %7 : vector<1x8x8xf32> to vector<8x8xf32>
    %21 = vector.extract_strided_slice %12 {offsets = [0, 0], sizes = [8, 16], strides = [1, 1]} : vector<8x192xf32> to vector<8x16xf32>
    %22 = vector.extract_strided_slice %12 {offsets = [0, 128], sizes = [8, 16], strides = [1, 1]} : vector<8x192xf32> to vector<8x16xf32>
    %23 = vector.extract_strided_slice %19 {offsets = [0, 0], sizes = [16, 8], strides = [1, 1]} : vector<64x8xf32> to vector<16x8xf32>
    %cst_17 = arith.constant dense<0.000000e+00> : vector<8x8xf32>
    %24 = tpu.matmul %21, %23, %cst_17 {dimension_numbers = #tpu.dot_dimension_numbers<[1], [0], [0], [1], [0, 0, 1, 1], [], []>} : vector<8x16xf32>, vector<16x8xf32>, vector<8x8xf32> -> vector<8x8xf32>
    %cst_18 = arith.constant 2.500000e-01 : f32
    %25 = vector.broadcast %cst_18 : f32 to vector<8x8xf32>
    %26 = arith.mulf %24, %25 : vector<8x8xf32>
    %27 = arith.addf %26, %20 : vector<8x8xf32>
    %cst_19 = arith.constant dense<0xFF800000> : vector<8xf32>
    %28 = vector.multi_reduction <maximumf>, %27, %cst_19 [1] : vector<8x8xf32> to vector<8xf32>
    %29 = vector.shape_cast %28 : vector<8xf32> to vector<8x1xf32>
    %30 = vector.broadcast %29 : vector<8x1xf32> to vector<8x8xf32>
    %31 = arith.subf %27, %30 : vector<8x8xf32>
    %32 = math.exp %31 : vector<8x8xf32>
    %cst_20 = arith.constant dense<0.000000e+00> : vector<8xf32>
    %33 = vector.multi_reduction <add>, %32, %cst_20 [1] : vector<8x8xf32> to vector<8xf32>
    %34 = vector.shape_cast %33 : vector<8xf32> to vector<8x1xf32>
    %35 = tpu.reciprocal %34 {approx = true} : vector<8x1xf32> -> vector<8x1xf32>
    %36 = vector.broadcast %35 : vector<8x1xf32> to vector<8x8xf32>
    %37 = arith.mulf %32, %36 : vector<8x8xf32>
    %cst_21 = arith.constant dense<0.000000e+00> : vector<8x16xf32>
    %38 = tpu.matmul %37, %22, %cst_21 {dimension_numbers = #tpu.dot_dimension_numbers<[1], [0], [0], [1], [0, 0, 1, 1], [], []>} : vector<8x8xf32>, vector<8x16xf32>, vector<8x16xf32> -> vector<8x16xf32>
    %39 = vector.extract_strided_slice %13 {offsets = [0, 0], sizes = [16, 64], strides = [1, 1]} : vector<64x64xf32> to vector<16x64xf32>
    %cst_22 = arith.constant dense<0.000000e+00> : vector<8x64xf32>
    %40 = tpu.matmul %38, %39, %cst_22 {dimension_numbers = #tpu.dot_dimension_numbers<[1], [0], [0], [1], [0, 0, 1, 1], [], []>} : vector<8x16xf32>, vector<16x64xf32>, vector<8x64xf32> -> vector<8x64xf32>
    %41 = arith.addf %17, %40 : vector<8x64xf32>
    %42 = vector.extract_strided_slice %12 {offsets = [0, 16], sizes = [8, 16], strides = [1, 1]} : vector<8x192xf32> to vector<8x16xf32>
    %43 = vector.extract_strided_slice %12 {offsets = [0, 144], sizes = [8, 16], strides = [1, 1]} : vector<8x192xf32> to vector<8x16xf32>
    %44 = vector.extract_strided_slice %19 {offsets = [16, 0], sizes = [16, 8], strides = [1, 1]} : vector<64x8xf32> to vector<16x8xf32>
    %cst_23 = arith.constant dense<0.000000e+00> : vector<8x8xf32>
    %45 = tpu.matmul %42, %44, %cst_23 {dimension_numbers = #tpu.dot_dimension_numbers<[1], [0], [0], [1], [0, 0, 1, 1], [], []>} : vector<8x16xf32>, vector<16x8xf32>, vector<8x8xf32> -> vector<8x8xf32>
    %cst_24 = arith.constant 2.500000e-01 : f32
    %46 = vector.broadcast %cst_24 : f32 to vector<8x8xf32>
    %47 = arith.mulf %45, %46 : vector<8x8xf32>
    %48 = arith.addf %47, %20 : vector<8x8xf32>
    %cst_25 = arith.constant dense<0xFF800000> : vector<8xf32>
    %49 = vector.multi_reduction <maximumf>, %48, %cst_25 [1] : vector<8x8xf32> to vector<8xf32>
    %50 = vector.shape_cast %49 : vector<8xf32> to vector<8x1xf32>
    %51 = vector.broadcast %50 : vector<8x1xf32> to vector<8x8xf32>
    %52 = arith.subf %48, %51 : vector<8x8xf32>
    %53 = math.exp %52 : vector<8x8xf32>
    %cst_26 = arith.constant dense<0.000000e+00> : vector<8xf32>
    %54 = vector.multi_reduction <add>, %53, %cst_26 [1] : vector<8x8xf32> to vector<8xf32>
    %55 = vector.shape_cast %54 : vector<8xf32> to vector<8x1xf32>
    %56 = tpu.reciprocal %55 {approx = true} : vector<8x1xf32> -> vector<8x1xf32>
    %57 = vector.broadcast %56 : vector<8x1xf32> to vector<8x8xf32>
    %58 = arith.mulf %53, %57 : vector<8x8xf32>
    %cst_27 = arith.constant dense<0.000000e+00> : vector<8x16xf32>
    %59 = tpu.matmul %58, %43, %cst_27 {dimension_numbers = #tpu.dot_dimension_numbers<[1], [0], [0], [1], [0, 0, 1, 1], [], []>} : vector<8x8xf32>, vector<8x16xf32>, vector<8x16xf32> -> vector<8x16xf32>
    %60 = vector.extract_strided_slice %13 {offsets = [16, 0], sizes = [16, 64], strides = [1, 1]} : vector<64x64xf32> to vector<16x64xf32>
    %cst_28 = arith.constant dense<0.000000e+00> : vector<8x64xf32>
    %61 = tpu.matmul %59, %60, %cst_28 {dimension_numbers = #tpu.dot_dimension_numbers<[1], [0], [0], [1], [0, 0, 1, 1], [], []>} : vector<8x16xf32>, vector<16x64xf32>, vector<8x64xf32> -> vector<8x64xf32>
    %62 = arith.addf %41, %61 : vector<8x64xf32>
    %63 = vector.extract_strided_slice %12 {offsets = [0, 32], sizes = [8, 16], strides = [1, 1]} : vector<8x192xf32> to vector<8x16xf32>
    %64 = vector.extract_strided_slice %12 {offsets = [0, 160], sizes = [8, 16], strides = [1, 1]} : vector<8x192xf32> to vector<8x16xf32>
    %65 = vector.extract_strided_slice %19 {offsets = [32, 0], sizes = [16, 8], strides = [1, 1]} : vector<64x8xf32> to vector<16x8xf32>
    %cst_29 = arith.constant dense<0.000000e+00> : vector<8x8xf32>
    %66 = tpu.matmul %63, %65, %cst_29 {dimension_numbers = #tpu.dot_dimension_numbers<[1], [0], [0], [1], [0, 0, 1, 1], [], []>} : vector<8x16xf32>, vector<16x8xf32>, vector<8x8xf32> -> vector<8x8xf32>
    %cst_30 = arith.constant 2.500000e-01 : f32
    %67 = vector.broadcast %cst_30 : f32 to vector<8x8xf32>
    %68 = arith.mulf %66, %67 : vector<8x8xf32>
    %69 = arith.addf %68, %20 : vector<8x8xf32>
    %cst_31 = arith.constant dense<0xFF800000> : vector<8xf32>
    %70 = vector.multi_reduction <maximumf>, %69, %cst_31 [1] : vector<8x8xf32> to vector<8xf32>
    %71 = vector.shape_cast %70 : vector<8xf32> to vector<8x1xf32>
    %72 = vector.broadcast %71 : vector<8x1xf32> to vector<8x8xf32>
    %73 = arith.subf %69, %72 : vector<8x8xf32>
    %74 = math.exp %73 : vector<8x8xf32>
    %cst_32 = arith.constant dense<0.000000e+00> : vector<8xf32>
    %75 = vector.multi_reduction <add>, %74, %cst_32 [1] : vector<8x8xf32> to vector<8xf32>
    %76 = vector.shape_cast %75 : vector<8xf32> to vector<8x1xf32>
    %77 = tpu.reciprocal %76 {approx = true} : vector<8x1xf32> -> vector<8x1xf32>
    %78 = vector.broadcast %77 : vector<8x1xf32> to vector<8x8xf32>
    %79 = arith.mulf %74, %78 : vector<8x8xf32>
    %cst_33 = arith.constant dense<0.000000e+00> : vector<8x16xf32>
    %80 = tpu.matmul %79, %64, %cst_33 {dimension_numbers = #tpu.dot_dimension_numbers<[1], [0], [0], [1], [0, 0, 1, 1], [], []>} : vector<8x8xf32>, vector<8x16xf32>, vector<8x16xf32> -> vector<8x16xf32>
    %81 = vector.extract_strided_slice %13 {offsets = [32, 0], sizes = [16, 64], strides = [1, 1]} : vector<64x64xf32> to vector<16x64xf32>
    %cst_34 = arith.constant dense<0.000000e+00> : vector<8x64xf32>
    %82 = tpu.matmul %80, %81, %cst_34 {dimension_numbers = #tpu.dot_dimension_numbers<[1], [0], [0], [1], [0, 0, 1, 1], [], []>} : vector<8x16xf32>, vector<16x64xf32>, vector<8x64xf32> -> vector<8x64xf32>
    %83 = arith.addf %62, %82 : vector<8x64xf32>
    %84 = vector.extract_strided_slice %12 {offsets = [0, 48], sizes = [8, 16], strides = [1, 1]} : vector<8x192xf32> to vector<8x16xf32>
    %85 = vector.extract_strided_slice %12 {offsets = [0, 176], sizes = [8, 16], strides = [1, 1]} : vector<8x192xf32> to vector<8x16xf32>
    %86 = vector.extract_strided_slice %19 {offsets = [48, 0], sizes = [16, 8], strides = [1, 1]} : vector<64x8xf32> to vector<16x8xf32>
    %cst_35 = arith.constant dense<0.000000e+00> : vector<8x8xf32>
    %87 = tpu.matmul %84, %86, %cst_35 {dimension_numbers = #tpu.dot_dimension_numbers<[1], [0], [0], [1], [0, 0, 1, 1], [], []>} : vector<8x16xf32>, vector<16x8xf32>, vector<8x8xf32> -> vector<8x8xf32>
    %cst_36 = arith.constant 2.500000e-01 : f32
    %88 = vector.broadcast %cst_36 : f32 to vector<8x8xf32>
    %89 = arith.mulf %87, %88 : vector<8x8xf32>
    %90 = arith.addf %89, %20 : vector<8x8xf32>
    %cst_37 = arith.constant dense<0xFF800000> : vector<8xf32>
    %91 = vector.multi_reduction <maximumf>, %90, %cst_37 [1] : vector<8x8xf32> to vector<8xf32>
    %92 = vector.shape_cast %91 : vector<8xf32> to vector<8x1xf32>
    %93 = vector.broadcast %92 : vector<8x1xf32> to vector<8x8xf32>
    %94 = arith.subf %90, %93 : vector<8x8xf32>
    %95 = math.exp %94 : vector<8x8xf32>
    %cst_38 = arith.constant dense<0.000000e+00> : vector<8xf32>
    %96 = vector.multi_reduction <add>, %95, %cst_38 [1] : vector<8x8xf32> to vector<8xf32>
    %97 = vector.shape_cast %96 : vector<8xf32> to vector<8x1xf32>
    %98 = tpu.reciprocal %97 {approx = true} : vector<8x1xf32> -> vector<8x1xf32>
    %99 = vector.broadcast %98 : vector<8x1xf32> to vector<8x8xf32>
    %100 = arith.mulf %95, %99 : vector<8x8xf32>
    %cst_39 = arith.constant dense<0.000000e+00> : vector<8x16xf32>
    %101 = tpu.matmul %100, %85, %cst_39 {dimension_numbers = #tpu.dot_dimension_numbers<[1], [0], [0], [1], [0, 0, 1, 1], [], []>} : vector<8x8xf32>, vector<8x16xf32>, vector<8x16xf32> -> vector<8x16xf32>
    %102 = vector.extract_strided_slice %13 {offsets = [48, 0], sizes = [16, 64], strides = [1, 1]} : vector<64x64xf32> to vector<16x64xf32>
    %cst_40 = arith.constant dense<0.000000e+00> : vector<8x64xf32>
    %103 = tpu.matmul %101, %102, %cst_40 {dimension_numbers = #tpu.dot_dimension_numbers<[1], [0], [0], [1], [0, 0, 1, 1], [], []>} : vector<8x16xf32>, vector<16x64xf32>, vector<8x64xf32> -> vector<8x64xf32>
    %104 = arith.addf %83, %103 : vector<8x64xf32>
    %cst_41 = arith.constant 0.000000e+00 : f32
    %105 = vector.broadcast %cst_41 : f32 to vector<8x64xf32>
    %106 = arith.maximumf %104, %105 : vector<8x64xf32>
    %c0_42 = arith.constant 0 : index
    %c0_43 = arith.constant 0 : index
    %107 = vector.load %arg9[%c0_42, %c0_43] : memref<64x192xf32, #tpu.memory_space<vmem>>, vector<64x192xf32>
    %cst_44 = arith.constant dense<0.000000e+00> : vector<8x192xf32>
    %108 = tpu.matmul %106, %107, %cst_44 {dimension_numbers = #tpu.dot_dimension_numbers<[1], [0], [0], [1], [0, 0, 1, 1], [], []>} : vector<8x64xf32>, vector<64x192xf32>, vector<8x192xf32> -> vector<8x192xf32>
    %c0_45 = arith.constant 0 : index
    %c0_46 = arith.constant 0 : index
    %109 = vector.load %arg10[%c0_45, %c0_46] : memref<1x192xf32, #tpu.memory_space<vmem>>, vector<1x192xf32>
    %110 = vector.broadcast %109 : vector<1x192xf32> to vector<8x192xf32>
    %111 = arith.addf %108, %110 : vector<8x192xf32>
    %c0_47 = arith.constant 0 : index
    %c0_48 = arith.constant 0 : index
    %112 = vector.load %arg11[%c0_47, %c0_48] : memref<64x64xf32, #tpu.memory_space<vmem>>, vector<64x64xf32>
    %cst_49 = arith.constant 0.000000e+00 : f32
    %113 = vector.broadcast %cst_49 : f32 to vector<8x64xf32>
    %c0_50 = arith.constant 0 : index
    %c0_51 = arith.constant 0 : index
    %114 = vector.load %arg12[%c0_50, %c0_51] : memref<1x64xf32, #tpu.memory_space<vmem>>, vector<1x64xf32>
    %115 = vector.broadcast %114 : vector<1x64xf32> to vector<8x64xf32>
    %116 = arith.addf %113, %115 : vector<8x64xf32>
    %117 = vector.extract_strided_slice %111 {offsets = [0, 64], sizes = [8, 64], strides = [1, 1]} : vector<8x192xf32> to vector<8x64xf32>
    %118 = tpu.transpose %117, [1, 0] : vector<8x64xf32> -> vector<64x8xf32>
    %119 = vector.shape_cast %7 : vector<1x8x8xf32> to vector<8x8xf32>
    %120 = vector.extract_strided_slice %111 {offsets = [0, 0], sizes = [8, 16], strides = [1, 1]} : vector<8x192xf32> to vector<8x16xf32>
    %121 = vector.extract_strided_slice %111 {offsets = [0, 128], sizes = [8, 16], strides = [1, 1]} : vector<8x192xf32> to vector<8x16xf32>
    %122 = vector.extract_strided_slice %118 {offsets = [0, 0], sizes = [16, 8], strides = [1, 1]} : vector<64x8xf32> to vector<16x8xf32>
    %cst_52 = arith.constant dense<0.000000e+00> : vector<8x8xf32>
    %123 = tpu.matmul %120, %122, %cst_52 {dimension_numbers = #tpu.dot_dimension_numbers<[1], [0], [0], [1], [0, 0, 1, 1], [], []>} : vector<8x16xf32>, vector<16x8xf32>, vector<8x8xf32> -> vector<8x8xf32>
    %cst_53 = arith.constant 2.500000e-01 : f32
    %124 = vector.broadcast %cst_53 : f32 to vector<8x8xf32>
    %125 = arith.mulf %123, %124 : vector<8x8xf32>
    %126 = arith.addf %125, %119 : vector<8x8xf32>
    %cst_54 = arith.constant dense<0xFF800000> : vector<8xf32>
    %127 = vector.multi_reduction <maximumf>, %126, %cst_54 [1] : vector<8x8xf32> to vector<8xf32>
    %128 = vector.shape_cast %127 : vector<8xf32> to vector<8x1xf32>
    %129 = vector.broadcast %128 : vector<8x1xf32> to vector<8x8xf32>
    %130 = arith.subf %126, %129 : vector<8x8xf32>
    %131 = math.exp %130 : vector<8x8xf32>
    %cst_55 = arith.constant dense<0.000000e+00> : vector<8xf32>
    %132 = vector.multi_reduction <add>, %131, %cst_55 [1] : vector<8x8xf32> to vector<8xf32>
    %133 = vector.shape_cast %132 : vector<8xf32> to vector<8x1xf32>
    %134 = tpu.reciprocal %133 {approx = true} : vector<8x1xf32> -> vector<8x1xf32>
    %135 = vector.broadcast %134 : vector<8x1xf32> to vector<8x8xf32>
    %136 = arith.mulf %131, %135 : vector<8x8xf32>
    %cst_56 = arith.constant dense<0.000000e+00> : vector<8x16xf32>
    %137 = tpu.matmul %136, %121, %cst_56 {dimension_numbers = #tpu.dot_dimension_numbers<[1], [0], [0], [1], [0, 0, 1, 1], [], []>} : vector<8x8xf32>, vector<8x16xf32>, vector<8x16xf32> -> vector<8x16xf32>
    %138 = vector.extract_strided_slice %112 {offsets = [0, 0], sizes = [16, 64], strides = [1, 1]} : vector<64x64xf32> to vector<16x64xf32>
    %cst_57 = arith.constant dense<0.000000e+00> : vector<8x64xf32>
    %139 = tpu.matmul %137, %138, %cst_57 {dimension_numbers = #tpu.dot_dimension_numbers<[1], [0], [0], [1], [0, 0, 1, 1], [], []>} : vector<8x16xf32>, vector<16x64xf32>, vector<8x64xf32> -> vector<8x64xf32>
    %140 = arith.addf %116, %139 : vector<8x64xf32>
    %141 = vector.extract_strided_slice %111 {offsets = [0, 16], sizes = [8, 16], strides = [1, 1]} : vector<8x192xf32> to vector<8x16xf32>
    %142 = vector.extract_strided_slice %111 {offsets = [0, 144], sizes = [8, 16], strides = [1, 1]} : vector<8x192xf32> to vector<8x16xf32>
    %143 = vector.extract_strided_slice %118 {offsets = [16, 0], sizes = [16, 8], strides = [1, 1]} : vector<64x8xf32> to vector<16x8xf32>
    %cst_58 = arith.constant dense<0.000000e+00> : vector<8x8xf32>
    %144 = tpu.matmul %141, %143, %cst_58 {dimension_numbers = #tpu.dot_dimension_numbers<[1], [0], [0], [1], [0, 0, 1, 1], [], []>} : vector<8x16xf32>, vector<16x8xf32>, vector<8x8xf32> -> vector<8x8xf32>
    %cst_59 = arith.constant 2.500000e-01 : f32
    %145 = vector.broadcast %cst_59 : f32 to vector<8x8xf32>
    %146 = arith.mulf %144, %145 : vector<8x8xf32>
    %147 = arith.addf %146, %119 : vector<8x8xf32>
    %cst_60 = arith.constant dense<0xFF800000> : vector<8xf32>
    %148 = vector.multi_reduction <maximumf>, %147, %cst_60 [1] : vector<8x8xf32> to vector<8xf32>
    %149 = vector.shape_cast %148 : vector<8xf32> to vector<8x1xf32>
    %150 = vector.broadcast %149 : vector<8x1xf32> to vector<8x8xf32>
    %151 = arith.subf %147, %150 : vector<8x8xf32>
    %152 = math.exp %151 : vector<8x8xf32>
    %cst_61 = arith.constant dense<0.000000e+00> : vector<8xf32>
    %153 = vector.multi_reduction <add>, %152, %cst_61 [1] : vector<8x8xf32> to vector<8xf32>
    %154 = vector.shape_cast %153 : vector<8xf32> to vector<8x1xf32>
    %155 = tpu.reciprocal %154 {approx = true} : vector<8x1xf32> -> vector<8x1xf32>
    %156 = vector.broadcast %155 : vector<8x1xf32> to vector<8x8xf32>
    %157 = arith.mulf %152, %156 : vector<8x8xf32>
    %cst_62 = arith.constant dense<0.000000e+00> : vector<8x16xf32>
    %158 = tpu.matmul %157, %142, %cst_62 {dimension_numbers = #tpu.dot_dimension_numbers<[1], [0], [0], [1], [0, 0, 1, 1], [], []>} : vector<8x8xf32>, vector<8x16xf32>, vector<8x16xf32> -> vector<8x16xf32>
    %159 = vector.extract_strided_slice %112 {offsets = [16, 0], sizes = [16, 64], strides = [1, 1]} : vector<64x64xf32> to vector<16x64xf32>
    %cst_63 = arith.constant dense<0.000000e+00> : vector<8x64xf32>
    %160 = tpu.matmul %158, %159, %cst_63 {dimension_numbers = #tpu.dot_dimension_numbers<[1], [0], [0], [1], [0, 0, 1, 1], [], []>} : vector<8x16xf32>, vector<16x64xf32>, vector<8x64xf32> -> vector<8x64xf32>
    %161 = arith.addf %140, %160 : vector<8x64xf32>
    %162 = vector.extract_strided_slice %111 {offsets = [0, 32], sizes = [8, 16], strides = [1, 1]} : vector<8x192xf32> to vector<8x16xf32>
    %163 = vector.extract_strided_slice %111 {offsets = [0, 160], sizes = [8, 16], strides = [1, 1]} : vector<8x192xf32> to vector<8x16xf32>
    %164 = vector.extract_strided_slice %118 {offsets = [32, 0], sizes = [16, 8], strides = [1, 1]} : vector<64x8xf32> to vector<16x8xf32>
    %cst_64 = arith.constant dense<0.000000e+00> : vector<8x8xf32>
    %165 = tpu.matmul %162, %164, %cst_64 {dimension_numbers = #tpu.dot_dimension_numbers<[1], [0], [0], [1], [0, 0, 1, 1], [], []>} : vector<8x16xf32>, vector<16x8xf32>, vector<8x8xf32> -> vector<8x8xf32>
    %cst_65 = arith.constant 2.500000e-01 : f32
    %166 = vector.broadcast %cst_65 : f32 to vector<8x8xf32>
    %167 = arith.mulf %165, %166 : vector<8x8xf32>
    %168 = arith.addf %167, %119 : vector<8x8xf32>
    %cst_66 = arith.constant dense<0xFF800000> : vector<8xf32>
    %169 = vector.multi_reduction <maximumf>, %168, %cst_66 [1] : vector<8x8xf32> to vector<8xf32>
    %170 = vector.shape_cast %169 : vector<8xf32> to vector<8x1xf32>
    %171 = vector.broadcast %170 : vector<8x1xf32> to vector<8x8xf32>
    %172 = arith.subf %168, %171 : vector<8x8xf32>
    %173 = math.exp %172 : vector<8x8xf32>
    %cst_67 = arith.constant dense<0.000000e+00> : vector<8xf32>
    %174 = vector.multi_reduction <add>, %173, %cst_67 [1] : vector<8x8xf32> to vector<8xf32>
    %175 = vector.shape_cast %174 : vector<8xf32> to vector<8x1xf32>
    %176 = tpu.reciprocal %175 {approx = true} : vector<8x1xf32> -> vector<8x1xf32>
    %177 = vector.broadcast %176 : vector<8x1xf32> to vector<8x8xf32>
    %178 = arith.mulf %173, %177 : vector<8x8xf32>
    %cst_68 = arith.constant dense<0.000000e+00> : vector<8x16xf32>
    %179 = tpu.matmul %178, %163, %cst_68 {dimension_numbers = #tpu.dot_dimension_numbers<[1], [0], [0], [1], [0, 0, 1, 1], [], []>} : vector<8x8xf32>, vector<8x16xf32>, vector<8x16xf32> -> vector<8x16xf32>
    %180 = vector.extract_strided_slice %112 {offsets = [32, 0], sizes = [16, 64], strides = [1, 1]} : vector<64x64xf32> to vector<16x64xf32>
    %cst_69 = arith.constant dense<0.000000e+00> : vector<8x64xf32>
    %181 = tpu.matmul %179, %180, %cst_69 {dimension_numbers = #tpu.dot_dimension_numbers<[1], [0], [0], [1], [0, 0, 1, 1], [], []>} : vector<8x16xf32>, vector<16x64xf32>, vector<8x64xf32> -> vector<8x64xf32>
    %182 = arith.addf %161, %181 : vector<8x64xf32>
    %183 = vector.extract_strided_slice %111 {offsets = [0, 48], sizes = [8, 16], strides = [1, 1]} : vector<8x192xf32> to vector<8x16xf32>
    %184 = vector.extract_strided_slice %111 {offsets = [0, 176], sizes = [8, 16], strides = [1, 1]} : vector<8x192xf32> to vector<8x16xf32>
    %185 = vector.extract_strided_slice %118 {offsets = [48, 0], sizes = [16, 8], strides = [1, 1]} : vector<64x8xf32> to vector<16x8xf32>
    %cst_70 = arith.constant dense<0.000000e+00> : vector<8x8xf32>
    %186 = tpu.matmul %183, %185, %cst_70 {dimension_numbers = #tpu.dot_dimension_numbers<[1], [0], [0], [1], [0, 0, 1, 1], [], []>} : vector<8x16xf32>, vector<16x8xf32>, vector<8x8xf32> -> vector<8x8xf32>
    %cst_71 = arith.constant 2.500000e-01 : f32
    %187 = vector.broadcast %cst_71 : f32 to vector<8x8xf32>
    %188 = arith.mulf %186, %187 : vector<8x8xf32>
    %189 = arith.addf %188, %119 : vector<8x8xf32>
    %cst_72 = arith.constant dense<0xFF800000> : vector<8xf32>
    %190 = vector.multi_reduction <maximumf>, %189, %cst_72 [1] : vector<8x8xf32> to vector<8xf32>
    %191 = vector.shape_cast %190 : vector<8xf32> to vector<8x1xf32>
    %192 = vector.broadcast %191 : vector<8x1xf32> to vector<8x8xf32>
    %193 = arith.subf %189, %192 : vector<8x8xf32>
    %194 = math.exp %193 : vector<8x8xf32>
    %cst_73 = arith.constant dense<0.000000e+00> : vector<8xf32>
    %195 = vector.multi_reduction <add>, %194, %cst_73 [1] : vector<8x8xf32> to vector<8xf32>
    %196 = vector.shape_cast %195 : vector<8xf32> to vector<8x1xf32>
    %197 = tpu.reciprocal %196 {approx = true} : vector<8x1xf32> -> vector<8x1xf32>
    %198 = vector.broadcast %197 : vector<8x1xf32> to vector<8x8xf32>
    %199 = arith.mulf %194, %198 : vector<8x8xf32>
    %cst_74 = arith.constant dense<0.000000e+00> : vector<8x16xf32>
    %200 = tpu.matmul %199, %184, %cst_74 {dimension_numbers = #tpu.dot_dimension_numbers<[1], [0], [0], [1], [0, 0, 1, 1], [], []>} : vector<8x8xf32>, vector<8x16xf32>, vector<8x16xf32> -> vector<8x16xf32>
    %201 = vector.extract_strided_slice %112 {offsets = [48, 0], sizes = [16, 64], strides = [1, 1]} : vector<64x64xf32> to vector<16x64xf32>
    %cst_75 = arith.constant dense<0.000000e+00> : vector<8x64xf32>
    %202 = tpu.matmul %200, %201, %cst_75 {dimension_numbers = #tpu.dot_dimension_numbers<[1], [0], [0], [1], [0, 0, 1, 1], [], []>} : vector<8x16xf32>, vector<16x64xf32>, vector<8x64xf32> -> vector<8x64xf32>
    %203 = arith.addf %182, %202 : vector<8x64xf32>
    %cst_76 = arith.constant 0.000000e+00 : f32
    %204 = vector.broadcast %cst_76 : f32 to vector<8x64xf32>
    %205 = arith.maximumf %203, %204 : vector<8x64xf32>
    %c0_77 = arith.constant 0 : index
    %c0_78 = arith.constant 0 : index
    %206 = vector.load %arg13[%c0_77, %c0_78] : memref<64x96xf32, #tpu.memory_space<vmem>>, vector<64x96xf32>
    %cst_79 = arith.constant dense<0.000000e+00> : vector<8x96xf32>
    %207 = tpu.matmul %205, %206, %cst_79 {dimension_numbers = #tpu.dot_dimension_numbers<[1], [0], [0], [1], [0, 0, 1, 1], [], []>} : vector<8x64xf32>, vector<64x96xf32>, vector<8x96xf32> -> vector<8x96xf32>
    %c0_80 = arith.constant 0 : index
    %c0_81 = arith.constant 0 : index
    %208 = vector.load %arg14[%c0_80, %c0_81] : memref<1x96xf32, #tpu.memory_space<vmem>>, vector<1x96xf32>
    %209 = vector.broadcast %208 : vector<1x96xf32> to vector<8x96xf32>
    %210 = arith.addf %207, %209 : vector<8x96xf32>
    %c0_82 = arith.constant 0 : index
    %c0_83 = arith.constant 0 : index
    %211 = vector.load %arg15[%c0_82, %c0_83] : memref<32x32xf32, #tpu.memory_space<vmem>>, vector<32x32xf32>
    %cst_84 = arith.constant 0.000000e+00 : f32
    %212 = vector.broadcast %cst_84 : f32 to vector<8x32xf32>
    %c0_85 = arith.constant 0 : index
    %c0_86 = arith.constant 0 : index
    %213 = vector.load %arg16[%c0_85, %c0_86] : memref<1x32xf32, #tpu.memory_space<vmem>>, vector<1x32xf32>
    %214 = vector.broadcast %213 : vector<1x32xf32> to vector<8x32xf32>
    %215 = arith.addf %212, %214 : vector<8x32xf32>
    %216 = vector.extract_strided_slice %210 {offsets = [0, 32], sizes = [8, 32], strides = [1, 1]} : vector<8x96xf32> to vector<8x32xf32>
    %217 = tpu.transpose %216, [1, 0] : vector<8x32xf32> -> vector<32x8xf32>
    %218 = vector.shape_cast %7 : vector<1x8x8xf32> to vector<8x8xf32>
    %219 = vector.extract_strided_slice %210 {offsets = [0, 0], sizes = [8, 8], strides = [1, 1]} : vector<8x96xf32> to vector<8x8xf32>
    %220 = vector.extract_strided_slice %210 {offsets = [0, 64], sizes = [8, 8], strides = [1, 1]} : vector<8x96xf32> to vector<8x8xf32>
    %221 = vector.extract_strided_slice %217 {offsets = [0, 0], sizes = [8, 8], strides = [1, 1]} : vector<32x8xf32> to vector<8x8xf32>
    %cst_87 = arith.constant dense<0.000000e+00> : vector<8x8xf32>
    %222 = tpu.matmul %219, %221, %cst_87 {dimension_numbers = #tpu.dot_dimension_numbers<[1], [0], [0], [1], [0, 0, 1, 1], [], []>} : vector<8x8xf32>, vector<8x8xf32>, vector<8x8xf32> -> vector<8x8xf32>
    %cst_88 = arith.constant 0.353553385 : f32
    %223 = vector.broadcast %cst_88 : f32 to vector<8x8xf32>
    %224 = arith.mulf %222, %223 : vector<8x8xf32>
    %225 = arith.addf %224, %218 : vector<8x8xf32>
    %cst_89 = arith.constant dense<0xFF800000> : vector<8xf32>
    %226 = vector.multi_reduction <maximumf>, %225, %cst_89 [1] : vector<8x8xf32> to vector<8xf32>
    %227 = vector.shape_cast %226 : vector<8xf32> to vector<8x1xf32>
    %228 = vector.broadcast %227 : vector<8x1xf32> to vector<8x8xf32>
    %229 = arith.subf %225, %228 : vector<8x8xf32>
    %230 = math.exp %229 : vector<8x8xf32>
    %cst_90 = arith.constant dense<0.000000e+00> : vector<8xf32>
    %231 = vector.multi_reduction <add>, %230, %cst_90 [1] : vector<8x8xf32> to vector<8xf32>
    %232 = vector.shape_cast %231 : vector<8xf32> to vector<8x1xf32>
    %233 = tpu.reciprocal %232 {approx = true} : vector<8x1xf32> -> vector<8x1xf32>
    %234 = vector.broadcast %233 : vector<8x1xf32> to vector<8x8xf32>
    %235 = arith.mulf %230, %234 : vector<8x8xf32>
    %cst_91 = arith.constant dense<0.000000e+00> : vector<8x8xf32>
    %236 = tpu.matmul %235, %220, %cst_91 {dimension_numbers = #tpu.dot_dimension_numbers<[1], [0], [0], [1], [0, 0, 1, 1], [], []>} : vector<8x8xf32>, vector<8x8xf32>, vector<8x8xf32> -> vector<8x8xf32>
    %237 = vector.extract_strided_slice %211 {offsets = [0, 0], sizes = [8, 32], strides = [1, 1]} : vector<32x32xf32> to vector<8x32xf32>
    %cst_92 = arith.constant dense<0.000000e+00> : vector<8x32xf32>
    %238 = tpu.matmul %236, %237, %cst_92 {dimension_numbers = #tpu.dot_dimension_numbers<[1], [0], [0], [1], [0, 0, 1, 1], [], []>} : vector<8x8xf32>, vector<8x32xf32>, vector<8x32xf32> -> vector<8x32xf32>
    %239 = arith.addf %215, %238 : vector<8x32xf32>
    %240 = vector.extract_strided_slice %210 {offsets = [0, 8], sizes = [8, 8], strides = [1, 1]} : vector<8x96xf32> to vector<8x8xf32>
    %241 = vector.extract_strided_slice %210 {offsets = [0, 72], sizes = [8, 8], strides = [1, 1]} : vector<8x96xf32> to vector<8x8xf32>
    %242 = vector.extract_strided_slice %217 {offsets = [8, 0], sizes = [8, 8], strides = [1, 1]} : vector<32x8xf32> to vector<8x8xf32>
    %cst_93 = arith.constant dense<0.000000e+00> : vector<8x8xf32>
    %243 = tpu.matmul %240, %242, %cst_93 {dimension_numbers = #tpu.dot_dimension_numbers<[1], [0], [0], [1], [0, 0, 1, 1], [], []>} : vector<8x8xf32>, vector<8x8xf32>, vector<8x8xf32> -> vector<8x8xf32>
    %cst_94 = arith.constant 0.353553385 : f32
    %244 = vector.broadcast %cst_94 : f32 to vector<8x8xf32>
    %245 = arith.mulf %243, %244 : vector<8x8xf32>
    %246 = arith.addf %245, %218 : vector<8x8xf32>
    %cst_95 = arith.constant dense<0xFF800000> : vector<8xf32>
    %247 = vector.multi_reduction <maximumf>, %246, %cst_95 [1] : vector<8x8xf32> to vector<8xf32>
    %248 = vector.shape_cast %247 : vector<8xf32> to vector<8x1xf32>
    %249 = vector.broadcast %248 : vector<8x1xf32> to vector<8x8xf32>
    %250 = arith.subf %246, %249 : vector<8x8xf32>
    %251 = math.exp %250 : vector<8x8xf32>
    %cst_96 = arith.constant dense<0.000000e+00> : vector<8xf32>
    %252 = vector.multi_reduction <add>, %251, %cst_96 [1] : vector<8x8xf32> to vector<8xf32>
    %253 = vector.shape_cast %252 : vector<8xf32> to vector<8x1xf32>
    %254 = tpu.reciprocal %253 {approx = true} : vector<8x1xf32> -> vector<8x1xf32>
    %255 = vector.broadcast %254 : vector<8x1xf32> to vector<8x8xf32>
    %256 = arith.mulf %251, %255 : vector<8x8xf32>
    %cst_97 = arith.constant dense<0.000000e+00> : vector<8x8xf32>
    %257 = tpu.matmul %256, %241, %cst_97 {dimension_numbers = #tpu.dot_dimension_numbers<[1], [0], [0], [1], [0, 0, 1, 1], [], []>} : vector<8x8xf32>, vector<8x8xf32>, vector<8x8xf32> -> vector<8x8xf32>
    %258 = vector.extract_strided_slice %211 {offsets = [8, 0], sizes = [8, 32], strides = [1, 1]} : vector<32x32xf32> to vector<8x32xf32>
    %cst_98 = arith.constant dense<0.000000e+00> : vector<8x32xf32>
    %259 = tpu.matmul %257, %258, %cst_98 {dimension_numbers = #tpu.dot_dimension_numbers<[1], [0], [0], [1], [0, 0, 1, 1], [], []>} : vector<8x8xf32>, vector<8x32xf32>, vector<8x32xf32> -> vector<8x32xf32>
    %260 = arith.addf %239, %259 : vector<8x32xf32>
    %261 = vector.extract_strided_slice %210 {offsets = [0, 16], sizes = [8, 8], strides = [1, 1]} : vector<8x96xf32> to vector<8x8xf32>
    %262 = vector.extract_strided_slice %210 {offsets = [0, 80], sizes = [8, 8], strides = [1, 1]} : vector<8x96xf32> to vector<8x8xf32>
    %263 = vector.extract_strided_slice %217 {offsets = [16, 0], sizes = [8, 8], strides = [1, 1]} : vector<32x8xf32> to vector<8x8xf32>
    %cst_99 = arith.constant dense<0.000000e+00> : vector<8x8xf32>
    %264 = tpu.matmul %261, %263, %cst_99 {dimension_numbers = #tpu.dot_dimension_numbers<[1], [0], [0], [1], [0, 0, 1, 1], [], []>} : vector<8x8xf32>, vector<8x8xf32>, vector<8x8xf32> -> vector<8x8xf32>
    %cst_100 = arith.constant 0.353553385 : f32
    %265 = vector.broadcast %cst_100 : f32 to vector<8x8xf32>
    %266 = arith.mulf %264, %265 : vector<8x8xf32>
    %267 = arith.addf %266, %218 : vector<8x8xf32>
    %cst_101 = arith.constant dense<0xFF800000> : vector<8xf32>
    %268 = vector.multi_reduction <maximumf>, %267, %cst_101 [1] : vector<8x8xf32> to vector<8xf32>
    %269 = vector.shape_cast %268 : vector<8xf32> to vector<8x1xf32>
    %270 = vector.broadcast %269 : vector<8x1xf32> to vector<8x8xf32>
    %271 = arith.subf %267, %270 : vector<8x8xf32>
    %272 = math.exp %271 : vector<8x8xf32>
    %cst_102 = arith.constant dense<0.000000e+00> : vector<8xf32>
    %273 = vector.multi_reduction <add>, %272, %cst_102 [1] : vector<8x8xf32> to vector<8xf32>
    %274 = vector.shape_cast %273 : vector<8xf32> to vector<8x1xf32>
    %275 = tpu.reciprocal %274 {approx = true} : vector<8x1xf32> -> vector<8x1xf32>
    %276 = vector.broadcast %275 : vector<8x1xf32> to vector<8x8xf32>
    %277 = arith.mulf %272, %276 : vector<8x8xf32>
    %cst_103 = arith.constant dense<0.000000e+00> : vector<8x8xf32>
    %278 = tpu.matmul %277, %262, %cst_103 {dimension_numbers = #tpu.dot_dimension_numbers<[1], [0], [0], [1], [0, 0, 1, 1], [], []>} : vector<8x8xf32>, vector<8x8xf32>, vector<8x8xf32> -> vector<8x8xf32>
    %279 = vector.extract_strided_slice %211 {offsets = [16, 0], sizes = [8, 32], strides = [1, 1]} : vector<32x32xf32> to vector<8x32xf32>
    %cst_104 = arith.constant dense<0.000000e+00> : vector<8x32xf32>
    %280 = tpu.matmul %278, %279, %cst_104 {dimension_numbers = #tpu.dot_dimension_numbers<[1], [0], [0], [1], [0, 0, 1, 1], [], []>} : vector<8x8xf32>, vector<8x32xf32>, vector<8x32xf32> -> vector<8x32xf32>
    %281 = arith.addf %260, %280 : vector<8x32xf32>
    %282 = vector.extract_strided_slice %210 {offsets = [0, 24], sizes = [8, 8], strides = [1, 1]} : vector<8x96xf32> to vector<8x8xf32>
    %283 = vector.extract_strided_slice %210 {offsets = [0, 88], sizes = [8, 8], strides = [1, 1]} : vector<8x96xf32> to vector<8x8xf32>
    %284 = vector.extract_strided_slice %217 {offsets = [24, 0], sizes = [8, 8], strides = [1, 1]} : vector<32x8xf32> to vector<8x8xf32>
    %cst_105 = arith.constant dense<0.000000e+00> : vector<8x8xf32>
    %285 = tpu.matmul %282, %284, %cst_105 {dimension_numbers = #tpu.dot_dimension_numbers<[1], [0], [0], [1], [0, 0, 1, 1], [], []>} : vector<8x8xf32>, vector<8x8xf32>, vector<8x8xf32> -> vector<8x8xf32>
    %cst_106 = arith.constant 0.353553385 : f32
    %286 = vector.broadcast %cst_106 : f32 to vector<8x8xf32>
    %287 = arith.mulf %285, %286 : vector<8x8xf32>
    %288 = arith.addf %287, %218 : vector<8x8xf32>
    %cst_107 = arith.constant dense<0xFF800000> : vector<8xf32>
    %289 = vector.multi_reduction <maximumf>, %288, %cst_107 [1] : vector<8x8xf32> to vector<8xf32>
    %290 = vector.shape_cast %289 : vector<8xf32> to vector<8x1xf32>
    %291 = vector.broadcast %290 : vector<8x1xf32> to vector<8x8xf32>
    %292 = arith.subf %288, %291 : vector<8x8xf32>
    %293 = math.exp %292 : vector<8x8xf32>
    %cst_108 = arith.constant dense<0.000000e+00> : vector<8xf32>
    %294 = vector.multi_reduction <add>, %293, %cst_108 [1] : vector<8x8xf32> to vector<8xf32>
    %295 = vector.shape_cast %294 : vector<8xf32> to vector<8x1xf32>
    %296 = tpu.reciprocal %295 {approx = true} : vector<8x1xf32> -> vector<8x1xf32>
    %297 = vector.broadcast %296 : vector<8x1xf32> to vector<8x8xf32>
    %298 = arith.mulf %293, %297 : vector<8x8xf32>
    %cst_109 = arith.constant dense<0.000000e+00> : vector<8x8xf32>
    %299 = tpu.matmul %298, %283, %cst_109 {dimension_numbers = #tpu.dot_dimension_numbers<[1], [0], [0], [1], [0, 0, 1, 1], [], []>} : vector<8x8xf32>, vector<8x8xf32>, vector<8x8xf32> -> vector<8x8xf32>
    %300 = vector.extract_strided_slice %211 {offsets = [24, 0], sizes = [8, 32], strides = [1, 1]} : vector<32x32xf32> to vector<8x32xf32>
    %cst_110 = arith.constant dense<0.000000e+00> : vector<8x32xf32>
    %301 = tpu.matmul %299, %300, %cst_110 {dimension_numbers = #tpu.dot_dimension_numbers<[1], [0], [0], [1], [0, 0, 1, 1], [], []>} : vector<8x8xf32>, vector<8x32xf32>, vector<8x32xf32> -> vector<8x32xf32>
    %302 = arith.addf %281, %301 : vector<8x32xf32>
    %cst_111 = arith.constant 0.000000e+00 : f32
    %303 = vector.broadcast %cst_111 : f32 to vector<8x32xf32>
    %304 = arith.maximumf %302, %303 : vector<8x32xf32>
    %c0_112 = arith.constant 0 : index
    %c0_113 = arith.constant 0 : index
    %305 = vector.load %arg17[%c0_112, %c0_113] : memref<32x68xf32, #tpu.memory_space<vmem>>, vector<32x68xf32>
    %cst_114 = arith.constant dense<0.000000e+00> : vector<8x68xf32>
    %306 = tpu.matmul %304, %305, %cst_114 {dimension_numbers = #tpu.dot_dimension_numbers<[1], [0], [0], [1], [0, 0, 1, 1], [], []>} : vector<8x32xf32>, vector<32x68xf32>, vector<8x68xf32> -> vector<8x68xf32>
    %c0_115 = arith.constant 0 : index
    %c0_116 = arith.constant 0 : index
    %307 = vector.load %arg18[%c0_115, %c0_116] : memref<1x68xf32, #tpu.memory_space<vmem>>, vector<1x68xf32>
    %308 = vector.broadcast %307 : vector<1x68xf32> to vector<8x68xf32>
    %309 = arith.addf %306, %308 : vector<8x68xf32>
    %310 = vector.extract_strided_slice %309 {offsets = [0, 0], sizes = [8, 4], strides = [1, 1]} : vector<8x68xf32> to vector<8x4xf32>
    %311 = vector.extract_strided_slice %309 {offsets = [0, 4], sizes = [8, 32], strides = [1, 1]} : vector<8x68xf32> to vector<8x32xf32>
    %312 = vector.extract_strided_slice %309 {offsets = [0, 36], sizes = [8, 32], strides = [1, 1]} : vector<8x68xf32> to vector<8x32xf32>
    %cst_117 = arith.constant dense<0xFF800000> : vector<8xf32>
    %313 = vector.multi_reduction <maximumf>, %310, %cst_117 [1] : vector<8x4xf32> to vector<8xf32>
    %314 = vector.shape_cast %313 : vector<8xf32> to vector<8x1xf32>
    %315 = vector.broadcast %314 : vector<8x1xf32> to vector<8x4xf32>
    %316 = arith.subf %310, %315 : vector<8x4xf32>
    %317 = math.exp %316 : vector<8x4xf32>
    %cst_118 = arith.constant dense<0.000000e+00> : vector<8xf32>
    %318 = vector.multi_reduction <add>, %317, %cst_118 [1] : vector<8x4xf32> to vector<8xf32>
    %319 = vector.shape_cast %318 : vector<8xf32> to vector<8x1xf32>
    %320 = vector.broadcast %319 : vector<8x1xf32> to vector<8x4xf32>
    %321 = arith.divf %317, %320 : vector<8x4xf32>
    %c0_119 = arith.constant 0 : index
    %c0_120 = arith.constant 0 : index
    %c0_121 = arith.constant 0 : index
    %322 = vector.load %arg3[%c0_119, %c0_120, %c0_121] : memref<1x8x4xf32, #tpu.memory_space<vmem>>, vector<1x8x4xf32>
    %323 = vector.shape_cast %322 : vector<1x8x4xf32> to vector<8x4xf32>
    %324 = arith.addf %310, %323 : vector<8x4xf32>
    %cst_122 = arith.constant 1.000000e+00 : f32
    %325 = vector.broadcast %cst_122 : f32 to vector<8x4xf32>
    %326 = arith.mulf %324, %325 : vector<8x4xf32>
    %cst_123 = arith.constant dense<0xFF800000> : vector<8xf32>
    %327 = vector.multi_reduction <maximumf>, %326, %cst_123 [1] : vector<8x4xf32> to vector<8xf32>
    %328 = vector.shape_cast %327 : vector<8xf32> to vector<8x1xf32>
    %329 = vector.broadcast %328 : vector<8x1xf32> to vector<8x4xf32>
    %330 = arith.subf %326, %329 : vector<8x4xf32>
    %331 = math.exp %330 : vector<8x4xf32>
    %cst_124 = arith.constant dense<0.000000e+00> : vector<8xf32>
    %332 = vector.multi_reduction <add>, %331, %cst_124 [1] : vector<8x4xf32> to vector<8xf32>
    %333 = vector.shape_cast %332 : vector<8xf32> to vector<8x1xf32>
    %334 = vector.broadcast %333 : vector<8x1xf32> to vector<8x4xf32>
    %335 = arith.divf %331, %334 : vector<8x4xf32>
    %c0_125 = arith.constant 0 : index
    %c0_126 = arith.constant 0 : index
    %336 = vector.load %arg19[%c0_125, %c0_126] : memref<4x128xf32, #tpu.memory_space<vmem>>, vector<4x128xf32>
    %cst_127 = arith.constant dense<0.000000e+00> : vector<8x128xf32>
    %337 = tpu.matmul %335, %336, %cst_127 {dimension_numbers = #tpu.dot_dimension_numbers<[1], [0], [0], [1], [0, 0, 1, 1], [], []>} : vector<8x4xf32>, vector<4x128xf32>, vector<8x128xf32> -> vector<8x128xf32>
    %c0_128 = arith.constant 0 : index
    %c0_129 = arith.constant 0 : index
    %338 = vector.load %arg20[%c0_128, %c0_129] : memref<1x128xf32, #tpu.memory_space<vmem>>, vector<1x128xf32>
    %339 = vector.broadcast %338 : vector<1x128xf32> to vector<8x128xf32>
    %340 = arith.addf %337, %339 : vector<8x128xf32>
    %341 = vector.extract_strided_slice %340 {offsets = [0, 0], sizes = [8, 32], strides = [1, 1]} : vector<8x128xf32> to vector<8x32xf32>
    %342 = arith.addf %311, %341 : vector<8x32xf32>
    %343 = vector.extract_strided_slice %340 {offsets = [0, 32], sizes = [8, 32], strides = [1, 1]} : vector<8x128xf32> to vector<8x32xf32>
    %344 = arith.addf %312, %343 : vector<8x32xf32>
    %cst_130 = arith.constant 0.000000e+00 : f32
    %345 = vector.broadcast %cst_130 : f32 to vector<8x32xf32>
    %346 = arith.maximumf %344, %345 : vector<8x32xf32>
    %347 = math.absf %344 : vector<8x32xf32>
    %cst_131 = arith.constant 0.000000e+00 : f32
    %348 = vector.broadcast %cst_131 : f32 to vector<8x32xf32>
    %349 = arith.subf %348, %347 : vector<8x32xf32>
    %350 = math.exp %349 : vector<8x32xf32>
    %cst_132 = arith.constant 1.000000e+00 : f32
    %351 = vector.broadcast %cst_132 : f32 to vector<8x32xf32>
    %352 = arith.addf %351, %350 : vector<8x32xf32>
    %353 = math.log %352 : vector<8x32xf32>
    %354 = arith.addf %346, %353 : vector<8x32xf32>
    %355 = vector.extract_strided_slice %340 {offsets = [0, 64], sizes = [8, 32], strides = [1, 1]} : vector<8x128xf32> to vector<8x32xf32>
    %356 = vector.extract_strided_slice %340 {offsets = [0, 96], sizes = [8, 32], strides = [1, 1]} : vector<8x128xf32> to vector<8x32xf32>
    %cst_133 = arith.constant 0.000000e+00 : f32
    %357 = vector.broadcast %cst_133 : f32 to vector<8x32xf32>
    %358 = arith.maximumf %356, %357 : vector<8x32xf32>
    %359 = math.absf %356 : vector<8x32xf32>
    %cst_134 = arith.constant 0.000000e+00 : f32
    %360 = vector.broadcast %cst_134 : f32 to vector<8x32xf32>
    %361 = arith.subf %360, %359 : vector<8x32xf32>
    %362 = math.exp %361 : vector<8x32xf32>
    %cst_135 = arith.constant 1.000000e+00 : f32
    %363 = vector.broadcast %cst_135 : f32 to vector<8x32xf32>
    %364 = arith.addf %363, %362 : vector<8x32xf32>
    %365 = math.log %364 : vector<8x32xf32>
    %366 = arith.addf %358, %365 : vector<8x32xf32>
    %c0_136 = arith.constant 0 : index
    %c0_137 = arith.constant 0 : index
    %c0_138 = arith.constant 0 : index
    %367 = vector.load %arg4[%c0_136, %c0_137, %c0_138] : memref<1x8x32xf32, #tpu.memory_space<vmem>>, vector<1x8x32xf32>
    %368 = vector.shape_cast %367 : vector<1x8x32xf32> to vector<8x32xf32>
    %369 = math.sqrt %354 : vector<8x32xf32>
    %370 = arith.mulf %369, %368 : vector<8x32xf32>
    %371 = arith.addf %342, %370 : vector<8x32xf32>
    %372 = tpu.transpose %371, [1, 0] : vector<8x32xf32> -> vector<32x8xf32>
    %cst_139 = arith.constant dense<0.000000e+00> : vector<8x8xf32>
    %373 = tpu.matmul %371, %372, %cst_139 {dimension_numbers = #tpu.dot_dimension_numbers<[1], [0], [0], [1], [0, 0, 1, 1], [], []>} : vector<8x32xf32>, vector<32x8xf32>, vector<8x8xf32> -> vector<8x8xf32>
    %cst_140 = arith.constant 0.000000e+00 : f32
    %374 = vector.broadcast %cst_140 : f32 to vector<8x8xf32>
    %375 = arith.subf %374, %373 : vector<8x8xf32>
    %376 = math.exp %375 : vector<8x8xf32>
    %cst_141 = arith.constant 1.000000e+00 : f32
    %377 = vector.broadcast %cst_141 : f32 to vector<8x8xf32>
    %378 = arith.addf %377, %376 : vector<8x8xf32>
    %cst_142 = arith.constant 1.000000e+00 : f32
    %379 = vector.broadcast %cst_142 : f32 to vector<8x8xf32>
    %380 = arith.divf %379, %378 : vector<8x8xf32>
    %cst_143 = arith.constant 0.000000e+00 : f32
    %381 = vector.broadcast %cst_143 : f32 to vector<8x76xf32>
    %382 = tpu.concatenate %342, %354, %371, %355, %366, %310, %321, %335, %380, %381 in 1 : vector<8x32xf32>, vector<8x32xf32>, vector<8x32xf32>, vector<8x32xf32>, vector<8x32xf32>, vector<8x4xf32>, vector<8x4xf32>, vector<8x4xf32>, vector<8x8xf32>, vector<8x76xf32> -> vector<8x256xf32>
    %383 = vector.shape_cast %382 : vector<8x256xf32> to vector<1x8x256xf32>
    %c0_144 = arith.constant 0 : index
    %c0_145 = arith.constant 0 : index
    %c0_146 = arith.constant 0 : index
    %384 = vector.load %arg21[%c0_144, %c0_145, %c0_146] : memref<1x8x256xf32, #tpu.memory_space<vmem>>, vector<1x8x256xf32>
    tpu.vector_store %arg21[%c0_144, %c0_145, %c0_146], %383 {strides = array<i32>} : memref<1x8x256xf32, #tpu.memory_space<vmem>>, vector<1x8x256xf32>,
    return
  }
  func.func @transform_0(%arg0: i32) -> (i32, i32, i32) {
    %c0_i32 = arith.constant 0 : i32
    %c0_i32_0 = arith.constant 0 : i32
    %c0_i32_1 = arith.constant 0 : i32
    return %arg0, %c0_i32, %c0_i32_0 : i32, i32, i32
  }
  func.func @transform_1(%arg0: i32) -> (i32, i32, i32) {
    %c0_i32 = arith.constant 0 : i32
    %c0_i32_0 = arith.constant 0 : i32
    %c0_i32_1 = arith.constant 0 : i32
    return %arg0, %c0_i32, %c0_i32_0 : i32, i32, i32
  }
  func.func @transform_2(%arg0: i32) -> (i32, i32, i32) {
    %c0_i32 = arith.constant 0 : i32
    %c0_i32_0 = arith.constant 0 : i32
    %c0_i32_1 = arith.constant 0 : i32
    return %arg0, %c0_i32, %c0_i32_0 : i32, i32, i32
  }
  func.func @transform_3(%arg0: i32) -> (i32, i32, i32) {
    %c0_i32 = arith.constant 0 : i32
    %c0_i32_0 = arith.constant 0 : i32
    %c0_i32_1 = arith.constant 0 : i32
    return %arg0, %c0_i32, %c0_i32_0 : i32, i32, i32
  }
  func.func @transform_4(%arg0: i32) -> (i32, i32) {
    %c0_i32 = arith.constant 0 : i32
    %c0_i32_0 = arith.constant 0 : i32
    %c0_i32_1 = arith.constant 0 : i32
    return %c0_i32, %c0_i32_0 : i32, i32
  }
  func.func @transform_5(%arg0: i32) -> (i32, i32) {
    %c0_i32 = arith.constant 0 : i32
    %c0_i32_0 = arith.constant 0 : i32
    %c0_i32_1 = arith.constant 0 : i32
    return %c0_i32, %c0_i32_0 : i32, i32
  }
  func.func @transform_6(%arg0: i32) -> (i32, i32) {
    %c0_i32 = arith.constant 0 : i32
    %c0_i32_0 = arith.constant 0 : i32
    %c0_i32_1 = arith.constant 0 : i32
    return %c0_i32, %c0_i32_0 : i32, i32
  }
  func.func @transform_7(%arg0: i32) -> (i32, i32) {
    %c0_i32 = arith.constant 0 : i32
    %c0_i32_0 = arith.constant 0 : i32
    %c0_i32_1 = arith.constant 0 : i32
    return %c0_i32, %c0_i32_0 : i32, i32
  }
  func.func @transform_8(%arg0: i32) -> (i32, i32) {
    %c0_i32 = arith.constant 0 : i32
    %c0_i32_0 = arith.constant 0 : i32
    %c0_i32_1 = arith.constant 0 : i32
    return %c0_i32, %c0_i32_0 : i32, i32
  }
  func.func @transform_9(%arg0: i32) -> (i32, i32) {
    %c0_i32 = arith.constant 0 : i32
    %c0_i32_0 = arith.constant 0 : i32
    %c0_i32_1 = arith.constant 0 : i32
    return %c0_i32, %c0_i32_0 : i32, i32
  }
  func.func @transform_10(%arg0: i32) -> (i32, i32) {
    %c0_i32 = arith.constant 0 : i32
    %c0_i32_0 = arith.constant 0 : i32
    %c0_i32_1 = arith.constant 0 : i32
    return %c0_i32, %c0_i32_0 : i32, i32
  }
  func.func @transform_11(%arg0: i32) -> (i32, i32) {
    %c0_i32 = arith.constant 0 : i32
    %c0_i32_0 = arith.constant 0 : i32
    %c0_i32_1 = arith.constant 0 : i32
    return %c0_i32, %c0_i32_0 : i32, i32
  }
  func.func @transform_12(%arg0: i32) -> (i32, i32) {
    %c0_i32 = arith.constant 0 : i32
    %c0_i32_0 = arith.constant 0 : i32
    %c0_i32_1 = arith.constant 0 : i32
    return %c0_i32, %c0_i32_0 : i32, i32
  }
  func.func @transform_13(%arg0: i32) -> (i32, i32) {
    %c0_i32 = arith.constant 0 : i32
    %c0_i32_0 = arith.constant 0 : i32
    %c0_i32_1 = arith.constant 0 : i32
    return %c0_i32, %c0_i32_0 : i32, i32
  }
  func.func @transform_14(%arg0: i32) -> (i32, i32) {
    %c0_i32 = arith.constant 0 : i32
    %c0_i32_0 = arith.constant 0 : i32
    %c0_i32_1 = arith.constant 0 : i32
    return %c0_i32, %c0_i32_0 : i32, i32
  }
  func.func @transform_15(%arg0: i32) -> (i32, i32) {
    %c0_i32 = arith.constant 0 : i32
    %c0_i32_0 = arith.constant 0 : i32
    %c0_i32_1 = arith.constant 0 : i32
    return %c0_i32, %c0_i32_0 : i32, i32
  }
  func.func @transform_16(%arg0: i32) -> (i32, i32) {
    %c0_i32 = arith.constant 0 : i32
    %c0_i32_0 = arith.constant 0 : i32
    %c0_i32_1 = arith.constant 0 : i32
    return %c0_i32, %c0_i32_0 : i32, i32
  }
  func.func @transform_17(%arg0: i32) -> (i32, i32) {
    %c0_i32 = arith.constant 0 : i32
    %c0_i32_0 = arith.constant 0 : i32
    %c0_i32_1 = arith.constant 0 : i32
    return %c0_i32, %c0_i32_0 : i32, i32
  }
  func.func @transform_18(%arg0: i32) -> (i32, i32) {
    %c0_i32 = arith.constant 0 : i32
    %c0_i32_0 = arith.constant 0 : i32
    %c0_i32_1 = arith.constant 0 : i32
    return %c0_i32, %c0_i32_0 : i32, i32
  }
  func.func @transform_19(%arg0: i32) -> (i32, i32) {
    %c0_i32 = arith.constant 0 : i32
    %c0_i32_0 = arith.constant 0 : i32
    %c0_i32_1 = arith.constant 0 : i32
    return %c0_i32, %c0_i32_0 : i32, i32
  }
  func.func @transform_20(%arg0: i32) -> (i32, i32, i32) {
    %c0_i32 = arith.constant 0 : i32
    %c0_i32_0 = arith.constant 0 : i32
    %c0_i32_1 = arith.constant 0 : i32
    return %arg0, %c0_i32, %c0_i32_0 : i32, i32, i32
  }
}

</mosaic_0001>

<bundles_post_ra>
// kernel: vae_forward.3
= control target key start
LH: loop header
LB: loop body
LE: loop exit
PB: predicated region body
PF: predicated region fallthrough
CT: control target
= control target key end

     0   :  { %s3038_s0 = inlined_call_operand.vmem [shape: f32[2,8,32], index: 0, kind: input, shape index: {}]   ;;  %s3039_s1 = inlined_call_operand.vmem [shape: f32[2,8,8], index: 1, kind: input, shape index: {}]   ;;  %s3040_s2 = inlined_call_operand.vmem [shape: f32[2,8,4], index: 2, kind: input, shape index: {}]   ;;  %s3041_s3 = inlined_call_operand.vmem [shape: f32[2,8,32], index: 3, kind: input, shape index: {}]   ;;  %s3042_s4 = inlined_call_operand.vmem [shape: f32[32,192], index: 4, kind: input, shape index: {}]   ;;  %s3043_s5 = inlined_call_operand.vmem [shape: f32[1,192], index: 5, kind: input, shape index: {}]   ;;  %s3044_s6 = inlined_call_operand.vmem [shape: f32[64,64], index: 6, kind: input, shape index: {}]   ;;  %s3045_s7 = inlined_call_operand.vmem [shape: f32[1,64], index: 7, kind: input, shape index: {}]   ;;  %s3046_s8 = inlined_call_operand.vmem [shape: f32[64,192], index: 8, kind: input, shape index: {}]   ;;  %s3047_s9 = inlined_call_operand.vmem [shape: f32[1,192], index: 9, kind: input, shape index: {}]   ;;  %s3048_s10 = inlined_call_operand.vmem [shape: f32[64,64], index: 10, kind: input, shape index: {}]   ;;  %s3049_s11 = inlined_call_operand.vmem [shape: f32[1,64], index: 11, kind: input, shape index: {}]   ;;  %s3050_s12 = inlined_call_operand.vmem [shape: f32[64,96], index: 12, kind: input, shape index: {}]   ;;  %s3051_s13 = inlined_call_operand.vmem [shape: f32[1,96], index: 13, kind: input, shape index: {}]   ;;  %s3052_s14 = inlined_call_operand.vmem [shape: f32[32,32], index: 14, kind: input, shape index: {}]   ;;  %s3053_s15 = inlined_call_operand.vmem [shape: f32[1,32], index: 15, kind: input, shape index: {}]   ;;  %s3054_s16 = inlined_call_operand.vmem [shape: f32[32,68], index: 16, kind: input, shape index: {}]   ;;  %s3055_s17 = inlined_call_operand.vmem [shape: f32[1,68], index: 17, kind: input, shape index: {}]   ;;  %s3056_s18 = inlined_call_operand.vmem [shape: f32[4,128], index: 18, kind: input, shape index: {}]   ;;  %s3057_s19 = inlined_call_operand.vmem [shape: f32[1,128], index: 19, kind: input, shape index: {}]   ;;  %s3058_s20 = inlined_call_operand.vmem [shape: f32[2,8,256], index: 20, kind: output, shape index: {}]  }
   0x1   :  { %3073 = sst [smem:[#allocation2_spill]] %s3038_s0 }
   0x2   :  { %3074 = sst [smem:[#allocation3_spill]] %s3039_s1  ;;  %s2616_s1 = smov 0  }
   0x3   :  { %3075 = sst [smem:[#allocation4_spill]] %s3040_s2 }
   0x4   :  { %3076 = sst [smem:[#allocation5_spill]] %s3041_s3 }
   0x5   :  { %3077 = sst [smem:[#allocation6_spill]] %s3042_s4 }
   0x6   :  { %3078 = sst [smem:[#allocation7_spill]] %s3043_s5 }
   0x7   :  { %3079 = sst [smem:[#allocation8_spill]] %s3044_s6 }
   0x8   :  { %3080 = sst [smem:[#allocation9_spill]] %s3045_s7 }
   0x9   :  { %3081 = sst [smem:[#allocation10_spill]] %s3046_s8 }
   0xa LB: > { %s2309_s22 = sadd.s32 4294967295, %s2490_s1   ;;  %p2313_p0 = scmp.ge.s32.totalorder %s2490_s1, 1  ;;  %s2490_s1 = sphi %s2616_s1, %s30_s1  }
   0xb   : > { %p588_p1 = scmp.lt.s32.totalorder %s2490_s1, 3 }
   0xd   : > { %p589_p2 = pnand %p2313_p0, %p588_p1 }
   0xe   : > { %s3082_s2 = sld [smem:[#allocation6_spill]] (!%p589_p2)  ;;  %p657_p3 = scmp.lt.s32.totalorder (!%p589_p2), %s2309_s22, 1 }
   0xf   : > { %592 = sbr.rel (%p589_p2) target bundleno = 5895 (0x1707), region = 100  ;;  %s3083_s21 = sld [smem:[#allocation2_spill]] (!%p589_p2) }
  0x10   : > { %s3084_s5 = sld [smem:[#allocation7_spill]] (!%p589_p2)  ;;  %s3066_s3 = smov (!%p589_p2), 112  }
  0x11   : > { %s3060_s26 = smov (!%p589_p2), 64   ;;  %s3062_s27 = smov (!%p589_p2), 48  }
  0x12   : > { %s3064_s30 = smov (!%p589_p2), 32   ;;  %s2499_s0 = smov (!%p589_p2), 16  }
  0x13   : > { %s3086_s6 = sld [smem:[#allocation8_spill]] (!%p589_p2)  ;;  %s3089_s28 = smov (!%p589_p2), 48  }
  0x14   : > { %v688_v0 = vld [vmem:[%s3082_s2 + $0x30] sm:$0xff]  ;;  %v686_v1 = vld [vmem:[%s3082_s2 + $0x20] sm:$0xff]  ;;  %s3098_s22 = smov (!%p657_p3, %s2309_s22), 1  ;;  %vm696_vm0 = vcmask 261120   ;;  %vm756_vm1 = vcmask 130048   ;;  %v689_v12 = vld [vmem:[%s3082_s2 + $0x38] sm:$0xff] }
  0x15   : > { %712 = vmatpush.msra.mxu0 %v688_v0  ;;  %v684_v2 = vld [vmem:[%s3082_s2 + $0x10] sm:$0xff]  ;;  %v682_v3 = vld [vmem:[%s3082_s2] sm:$0xff]  ;;  %s2639_s29 = sshll.u32 %s3098_s22, 3  ;;  %v687_v13 = vld [vmem:[%s3082_s2 + $0x28] sm:$0xff]  ;;  %732 = vmatpush.msra.mxu1 %v689_v12  ;;  %v2495_v17 = vmov -1e+09  }
  0x16   : > { %s660_s23 = scalar_lea.vmem %s3083_s21, %s2639_s29  ;;  %v690_v5 = vld [vmem:[%s3084_s5] sm:$0x3]  ;;  %v685_v14 = vld [vmem:[%s3082_s2 + $0x18] sm:$0xff]  ;;  %v683_v15 = vld [vmem:[%s3082_s2 + $0x8] sm:$0xff]  ;;  %vm783_vm3 = vcmask 64512   ;;  %s3087_s7 = sld [smem:[#allocation9_spill]] }
  0x17   : > { %713 = vmatpush.msra.mxu0 %v686_v1  ;;  %v678_v4 = vld [vmem:[%s660_s23] sm:$0xff]  ;;  %v692_v6 = vperm.slane %v690_v5, 0  ;;  %733 = vmatpush.msra.mxu1 %v687_v13  ;;  %v693_v27 = vperm.slane %v690_v5, 1  ;;  %s3088_s8 = sld [smem:[#allocation10_spill]]  ;;  %vm1139_vm4 = vcmask 523264   ;;  %s3090_s4 = smov 64  }
  0x18   : > { %s3094_s5 = smov 96   ;;  %s2501_s2 = smov 120   ;;  %vm1997_vm5 = vcmask 31744   ;;  %vm2056_vm6 = vcmask 1043456   ;;  %vm2205_vm13 = vcmask 785408  }
  0x19   : > { %714 = vmatpush.msra.mxu0 %v684_v2  ;;  %734 = vmatpush.msra.mxu1 %v685_v14  ;;  %v741_v40 = vld [vmem:[%s3086_s6 + $0x8] sm:$0xff]  ;;  %v740_v41 = vld [vmem:[%s3086_s6] sm:$0xff]  ;;  %v743_v42 = vld [vmem:[%s3086_s6 + $0x18] sm:$0xff]  ;;  %s2505_s24 = smov 40   ;;  %s2506_s21 = smov 36  }
  0x1a   : > { %v742_v43 = vld [vmem:[%s3086_s6 + $0x10] sm:$0xff] }
  0x1b   : > { %715 = vmatpush.msra.mxu0 %v682_v3  ;;  %735 = vmatpush.msra.mxu1 %v683_v15 }
  0x1c   : > { %2320 = vmatmul.msk.f32.vlgmr.msra.gmra.mxu0 %vm696_vm0, %v678_v4  ;;  %2321 = vmatmul.msk.f32.vlgmr.msra.gmra.mxu1 %vm696_vm0, %v678_v4  ;;  %v2408_v59 = vld [vmem:[%s3087_s7] ss:$0 sm:$0xff] }
  0x1d   : > { %927 = vmatpush.msrb.mxu1 %v743_v42  ;;  %v1122_v42 = vld [vmem:[%s3088_s8 + $0x28] sm:$0xff] }
  0x1f   : > { %928 = vmatpush.msrb.mxu1 %v742_v43  ;;  %v1119_v43 = vld [vmem:[%s3088_s8 + $0x10] sm:$0xff] }
  0x99   : > { %v717_v7 = vpop.f32.mrf.mxu0  ;;  %v737_v28 = vpop.f32.mrf.mxu1 }
  0x9a   : > { %v2649_v8 = vadd.f32 %v717_v7, %v692_v6  ;;  %v2687_v29 = vadd.f32 %v737_v28, %v693_v27  ;;  %v745_v27 = vld [vmem:[%s3086_s6 + $0x28] sm:$0xff]  ;;  %v744_v28 = vld [vmem:[%s3086_s6 + $0x20] sm:$0xff] }
  0x9c   : > { %842 = vrot.lane.b32.xlu1 %v2649_v8, %s3066_s3  ;;  %754 = vrot.lane.b32.xlu0 %v2649_v8, %s3060_s26  ;;  %s3085_s26 = sld [smem:[#allocation3_spill]] }
  0x9d   : > { %813 = vmatpush.msra.mxu3 %v2687_v29 }
  0x9f   : > { %835 = vmatpush.msrb.mxu3 %v741_v40  ;;  %v1124_v40 = vld [vmem:[%s3088_s8 + $0x38] sm:$0xff] }
  0xa1   : > { %836 = vmatpush.msrb.mxu3 %v740_v41  ;;  %v1121_v41 = vld [vmem:[%s3088_s8 + $0x20] sm:$0xff] }
  0xa4   : > { %844 = vrot.lane.b32.xlu0 %v2649_v8, %s3062_s27  ;;  %s664_s27 = scalar_lea.vmem %s3085_s26, %s2639_s29  ;;  %s3068_s26 = smov 96  }
  0xa5   : > { %v679_v16 = vld [vmem:[%s664_s27] sm:$0xff]  ;;  %s3070_s27 = smov 80  }
  0xa6   : > { %vm680_vm2 = vcmp.gt.f32.partialorder %v679_v16, 0.0 }
  0xa7   : > { %v2679_v18 = vsel %vm680_vm2, 0.0, %v2495_v17 }
 0x10e   : > { %v755_v9 = vpop.permute.xlu0 %754  ;;  %v843_v11 = vpop.permute.xlu1 %842 }
 0x10f   : > { %2322 = vmatpush.xpose.msk.msra.mxu2 %vm756_vm1, %v755_v9 }
 0x112   : > { %2323 = vmatmul.msk.f32.vlgmr.msra.gmra.mxu2 %vm756_vm1, %v2649_v8 }
 0x116   : > { %v845_v10 = vpop.permute.xlu0 %844 }
 0x117   : > { %2326 = vmatpush.xpose.msk.msrb.mxu2 %vm756_vm1, %v845_v10 }
 0x11a   : > { %2327 = vmatmul.msk.f32.vlgmr.msrb.gmra.mxu2 %vm756_vm1, %v843_v11 }
 0x195   : > { %v778_v19 = vpop.f32.mrf.mxu2 }
 0x196   : > { %v781_v20 = vmul.f32 0.25, %v778_v19 }
 0x198   : > { %v782_v21 = vadd.f32 %v781_v20, %v2679_v18 }
 0x19a   : > { %v784_v22 = vsel %vm783_vm3, %v782_v21, -inf }
 0x19b   : > { %785 = vmax.xlane.f32.xlu1 %v784_v22 }
 0x19d   : > { %v867_v23 = vpop.f32.mrf.mxu2 }
 0x19e   : > { %v870_v24 = vmul.f32 0.25, %v867_v23 }
 0x1a0   : > { %v871_v25 = vadd.f32 %v870_v24, %v2679_v18 }
 0x1a2   : > { %v872_v26 = vsel %vm783_vm3, %v871_v25, -inf }
 0x1a3   : > { %873 = vmax.xlane.f32.xlu2 %v872_v26  ;;  %v746_v26 = vld [vmem:[%s3086_s6 + $0x30] sm:$0xff] }
 0x1b4   : > { %934 = vrot.lane.b32.xlu1 %v2649_v8, %s3068_s26 }
 0x1bc   : > { %1066 = vrot.lane.b32.xlu1 %v2687_v29, %s3070_s27 }
 0x20e   : > { %v786_v30 = vpop.xlane.xlu1 %785 }
 0x20f   : > { %v787_v31 = vsub.f32 %v782_v21, %v786_v30 }
 0x211   : > { %v788_v32 = vmul.f32 1.442695, %v787_v31  ;;  %v1131_v31 = vld [vmem:[%s3088_s8 + $0x70] sm:$0xff] }
 0x213   : > { %2414 = vpow2.f32 %v788_v32  ;;  %v1132_v32 = vld [vmem:[%s3088_s8 + $0x78] sm:$0xff] }
 0x216   : > { %v874_v33 = vpop.xlane.xlu2 %873 }
 0x217   : > { %v875_v34 = vsub.f32 %v871_v25, %v874_v33  ;;  %v747_v25 = vld [vmem:[%s3086_s6 + $0x38] sm:$0xff]  ;;  %v1129_v33 = vld [vmem:[%s3088_s8 + $0x60] sm:$0xff]  ;;  %s2500_s6 = smov 88  }
 0x219   : > { %v2415_v35 = vpop.eup %2414  ;;  %v876_v36 = vmul.f32 1.442695, %v875_v34  ;;  %v1130_v34 = vld [vmem:[%s3088_s8 + $0x68] sm:$0xff] }
 0x21a   : > { %v790_v37 = vsel %vm783_vm3, %v2415_v35, 0.0 }
 0x21b   : > { %2416 = vpow2.f32 %v876_v36  ;;  %791 = vadd.xlane.f32.xlu2 %v790_v37  ;;  %v1128_v36 = vld [vmem:[%s3088_s8 + $0x58] sm:$0xff]  ;;  %v1125_v37 = vld [vmem:[%s3088_s8 + $0x40] sm:$0xff] }
 0x221   : > { %v2417_v38 = vpop.eup %2416 }
 0x222   : > { %v878_v39 = vsel %vm783_vm3, %v2417_v38, 0.0 }
 0x223   : > { %879 = vadd.xlane.f32.xlu0 %v878_v39  ;;  %v1123_v39 = vld [vmem:[%s3088_s8 + $0x30] sm:$0xff] }
 0x226   : > { %v935_v53 = vpop.permute.xlu1 %934 }
 0x22e   : > { %v1067_v55 = vpop.permute.xlu1 %1066 }
 0x233   : > { %884 = vrot.lane.b32.xlu2 %v2687_v29, %s3066_s3  ;;  %s3093_s3 = smov 80  }
 0x23b   : > { %936 = vrot.lane.b32.xlu2 %v2649_v8, %s3064_s30  ;;  %s2504_s30 = smov 56  }
 0x243   : > { %1027 = vrot.lane.b32.xlu2 %v2649_v8, %s2499_s0 }
 0x24b   : > { %1025 = vrot.lane.b32.xlu2 %v2649_v8, %s3070_s27  ;;  %s3092_s27 = smov 32  }
 0x28e   : > { %v792_v44 = vpop.xlane.xlu2 %791 }
 0x28f   : > { %2418 = vrcp.f32 %v792_v44  ;;  %v1120_v44 = vld [vmem:[%s3088_s8 + $0x18] sm:$0xff] }
 0x295   : > { %v2419_v45 = vpop.eup %2418 }
 0x296   : > { %v880_v46 = vpop.xlane.xlu0 %879  ;;  %v885_v47 = vpop.permute.xlu2 %884  ;;  %v794_v48 = vmul.f32 %v2419_v45, %v2415_v35  ;;  %v1127_v35 = vld [vmem:[%s3088_s8 + $0x50] sm:$0xff]  ;;  %v1117_v45 = vld [vmem:[%s3088_s8] sm:$0xff] }
 0x297   : > { %2420 = vrcp.f32 %v880_v46  ;;  %905 = vmatpush.msrb.mxu0 %v885_v47  ;;  %v1118_v46 = vld [vmem:[%s3088_s8 + $0x8] sm:$0xff] }
 0x298   : > { %2324 = vmatmul.msk.f32.vlgmr.msra.gmra.mxu3 %vm783_vm3, %v794_v48 }
 0x299   : > { %1018 = vmatpush.msra.mxu0 %v745_v27 }
 0x29b   : > { %1019 = vmatpush.msra.mxu0 %v744_v28 }
 0x29d   : > { %v2421_v49 = vpop.eup %2420 }
 0x29e   : > { %v937_v50 = vpop.permute.xlu2 %936  ;;  %v882_v51 = vmul.f32 %v2421_v49, %v2417_v38  ;;  %v1126_v38 = vld [vmem:[%s3088_s8 + $0x48] sm:$0xff] }
 0x29f   : > { %2330 = vmatpush.xpose.msk.msra.mxu3 %vm756_vm1, %v937_v50 }
 0x2a0   : > { %2328 = vmatmul.msk.f32.vlgmr.msrb.gmra.mxu0 %vm783_vm3, %v882_v51 }
 0x2a1   : > { %1151 = vmatpush.msrb.mxu0 %v1131_v31 }
 0x2a3   : > { %1152 = vmatpush.msrb.mxu0 %v1129_v33 }
 0x2a5   : > { %1153 = vmatpush.msrb.mxu0 %v1127_v35 }
 0x2a6   : > { %v1028_v52 = vpop.permute.xlu2 %1027 }
 0x2a7   : > { %2334 = vmatpush.xpose.msk.msra.mxu1 %vm756_vm1, %v1028_v52  ;;  %1154 = vmatpush.msrb.mxu0 %v1125_v37  ;;  %v1133_v52 = vld [vmem:[%s3047_s9] sm:$0x3] }
 0x2a9   : > { %1155 = vmatpush.msrb.mxu0 %v1123_v39 }
 0x2ab   : > { %1156 = vmatpush.msrb.mxu0 %v1121_v41 }
 0x2ad   : > { %1157 = vmatpush.msrb.mxu0 %v1119_v43 }
 0x2ae   : > { %v1026_v57 = vpop.permute.xlu2 %1025 }
 0x2af   : > { %1158 = vmatpush.msrb.mxu0 %v1117_v45 }
 0x31b   : > { %v815_v54 = vpop.f32.mrf.mxu3 }
 0x31c   : > { %2325 = vmatmul.msk.f32.vlgmr.msrb.gmra.mxu3 %vm756_vm1, %v815_v54  ;;  %v1136_v54 = vperm.slane %v1133_v52, 1 }
 0x31d   : > { %1087 = vmatpush.msrb.mxu3 %v1067_v55  ;;  %v907_v56 = vpop.f32.mrf.mxu0 }
 0x31e   : > { %2329 = vmatmul.msk.f32.vlgmr.msrb.gmra.mxu1 %vm756_vm1, %v907_v56 }
 0x31f   : > { %1171 = vmatpush.msrb.mxu1 %v1132_v32 }
 0x321   : > { %1172 = vmatpush.msrb.mxu1 %v1130_v34 }
 0x323   : > { %1173 = vmatpush.msrb.mxu1 %v1128_v36 }
 0x324   : > { %2331 = vmatmul.msk.f32.vlgmr.msra.gmra.mxu3 %vm756_vm1, %v935_v53  ;;  %v1135_v53 = vperm.slane %v1133_v52, 0 }
 0x325   : > { %1174 = vmatpush.msrb.mxu1 %v1126_v38 }
 0x326   : > { %2335 = vmatmul.msk.f32.vlgmr.msra.gmra.mxu1 %vm756_vm1, %v1026_v57 }
 0x327   : > { %1175 = vmatpush.msrb.mxu1 %v1124_v40 }
 0x329   : > { %1176 = vmatpush.msrb.mxu1 %v1122_v42 }
 0x32b   : > { %1177 = vmatpush.msrb.mxu1 %v1120_v44 }
 0x32d   : > { %1178 = vmatpush.msrb.mxu1 %v1118_v46 }
 0x39b   : > { %v930_v58 = vpop.f32.mrf.mxu1 }
 0x39f   : > { %v838_v60 = vpop.f32.mrf.mxu3 }
 0x3a0   : > { %v841_v61 = vadd.f32 %v2408_v59, %v838_v60 }
 0x3a2   : > { %v2725_v62 = vadd.f32 %v930_v58, %v841_v61 }
 0x3a3   : > { %v1050_v63 = vpop.f32.mrf.mxu1 }
 0x3a4   : > { %v1053_v0 = vmul.f32 0.25, %v1050_v63 }
 0x3a6   : > { %v1054_v1 = vadd.f32 %v1053_v0, %v2679_v18 }
 0x3a7   : > { %v959_v2 = vpop.f32.mrf.mxu3 }
 0x3a8   : > { %v962_v3 = vmul.f32 0.25, %v959_v2  ;;  %v1055_v4 = vsel %vm783_vm3, %v1054_v1, -inf }
 0x3a9   : > { %1056 = vmax.xlane.f32.xlu0 %v1055_v4 }
 0x3aa   : > { %v963_v5 = vadd.f32 %v962_v3, %v2679_v18 }
 0x3ac   : > { %v964_v6 = vsel %vm783_vm3, %v963_v5, -inf }
 0x3ad   : > { %965 = vmax.xlane.f32.xlu2 %v964_v6  ;;  %v1184_v6 = vld [vmem:[%s3048_s10 + $0x8] sm:$0xff] }
 0x41c   : > { %v1057_v7 = vpop.xlane.xlu0 %1056 }
 0x41d   : > { %v1058_v8 = vsub.f32 %v1054_v1, %v1057_v7  ;;  %v1183_v7 = vld [vmem:[%s3048_s10] sm:$0xff] }
 0x41f   : > { %v1059_v9 = vmul.f32 1.442695, %v1058_v8  ;;  %v1186_v8 = vld [vmem:[%s3048_s10 + $0x18] sm:$0xff] }
 0x420   : > { %v966_v10 = vpop.xlane.xlu2 %965  ;;  %1368 = vmatpush.msra.mxu1 %v1186_v8 }
 0x421   : > { %2422 = vpow2.f32 %v1059_v9  ;;  %v967_v11 = vsub.f32 %v963_v5, %v966_v10  ;;  %v1185_v9 = vld [vmem:[%s3048_s10 + $0x10] sm:$0xff] }
 0x422   : > { %1369 = vmatpush.msra.mxu1 %v1185_v9  ;;  %v1560_v9 = vld [vmem:[%s3050_s12 + $0x10] sm:$0xff] }
 0x423   : > { %v968_v12 = vmul.f32 1.442695, %v967_v11 }
 0x425   : > { %2424 = vpow2.f32 %v968_v12 }
 0x427   : > { %v2423_v13 = vpop.eup %2422 }
 0x428   : > { %v1061_v14 = vsel %vm783_vm3, %v2423_v13, 0.0 }
 0x429   : > { %1062 = vadd.xlane.f32.xlu0 %v1061_v14 }
 0x42b   : > { %v2425_v15 = vpop.eup %2424 }
 0x42c   : > { %v970_v16 = vsel %vm783_vm3, %v2425_v15, 0.0 }
 0x431   : > { %971 = vadd.xlane.f32.xlu0 %v970_v16 }
 0x445   : > { %975 = vrot.lane.b32.xlu0 %v2687_v29, %s3068_s26  ;;  %s3091_s26 = smov 112  }
 0x49c   : > { %v1063_v17 = vpop.xlane.xlu0 %1062 }
 0x49d   : > { %2426 = vrcp.f32 %v1063_v17 }
 0x4a3   : > { %v2427_v19 = vpop.eup %2426 }
 0x4a4   : > { %v1065_v20 = vmul.f32 %v2427_v19, %v2423_v13  ;;  %v972_v21 = vpop.xlane.xlu0 %971 }
 0x4a5   : > { %2428 = vrcp.f32 %v972_v21 }
 0x4a6   : > { %2336 = vmatmul.msk.f32.vlgmr.msrb.gmra.mxu3 %vm783_vm3, %v1065_v20 }
 0x4ab   : > { %v2429_v22 = vpop.eup %2428 }
 0x4ac   : > { %v974_v23 = vmul.f32 %v2429_v22, %v2425_v15 }
 0x4b7   : > { %v976_v24 = vpop.permute.xlu0 %975 }
 0x4b8   : > { %996 = vmatpush.msra.mxu2 %v976_v24 }
 0x4b9   : > { %2332 = vmatmul.msk.f32.vlgmr.msra.gmra.mxu2 %vm783_vm3, %v974_v23 }
 0x4ba   : > { %1109 = vmatpush.msrb.mxu2 %v747_v25 }
 0x4bc   : > { %1110 = vmatpush.msrb.mxu2 %v746_v26 }
 0x529   : > { %v1089_v29 = vpop.f32.mrf.mxu3 }
 0x52a   : > { %2337 = vmatmul.msk.f32.vlgmr.msrb.gmra.mxu2 %vm756_vm1, %v1089_v29 }
 0x53c   : > { %v998_v30 = vpop.f32.mrf.mxu2 }
 0x53d   : > { %2333 = vmatmul.msk.f32.vlgmr.msra.gmra.mxu0 %vm756_vm1, %v998_v30 }
 0x5ad   : > { %v1112_v49 = vpop.f32.mrf.mxu2 }
 0x5ba   : > { %v1021_v47 = vpop.f32.mrf.mxu0 }
 0x5bb   : > { %v1024_v48 = vadd.f32 %v1021_v47, %v2725_v62 }
 0x5bd   : > { %v1115_v50 = vadd.f32 %v1112_v49, %v1024_v48 }
 0x5bf   : > { %v1116_v51 = vmax.f32 %v1115_v50, 0.0 }
 0x5c1   : > { %2338 = vmatmul.msk.f32.vlgmr.msrb.gmra.mxu0 %vm1139_vm4, %v1116_v51  ;;  %2339 = vmatmul.msk.f32.vlgmr.msrb.gmra.mxu1 %vm1139_vm4, %v1116_v51 }
 0x63e   : > { %v1160_v55 = vpop.f32.mrf.mxu0  ;;  %v1180_v56 = vpop.f32.mrf.mxu1 }
 0x63f   : > { %v1161_v57 = vadd.f32 %v1160_v55, %v1135_v53  ;;  %v2805_v58 = vadd.f32 %v1180_v56, %v1136_v54 }
 0x641   : > { %1254 = vmatpush.msra.mxu2 %v2805_v58  ;;  %1285 = vrot.lane.b32.xlu2 %v1161_v57, %s3089_s28 }
 0x642   : > { %1197 = vrot.lane.b32.xlu1 %v1161_v57, %s3090_s4 }
 0x649   : > { %1283 = vrot.lane.b32.xlu2 %v1161_v57, %s3091_s26 }
 0x69b   : > { %v1286_v59 = vpop.permute.xlu2 %1285 }
 0x69c   : > { %2344 = vmatpush.xpose.msk.msrb.mxu2 %vm756_vm1, %v1286_v59 }
 0x6a3   : > { %v1284_v13 = vpop.permute.xlu2 %1283 }
 0x6b4   : > { %v1198_v60 = vpop.permute.xlu1 %1197 }
 0x6b5   : > { %2340 = vmatpush.xpose.msk.msra.mxu3 %vm756_vm1, %v1198_v60  ;;  %v1188_v60 = vld [vmem:[%s3048_s10 + $0x28] sm:$0xff] }
 0x6b8   : > { %2341 = vmatmul.msk.f32.vlgmr.msra.gmra.mxu3 %vm756_vm1, %v1161_v57 }
 0x6b9   : > { %1276 = vmatpush.msrb.mxu3 %v1184_v6  ;;  %v1562_v6 = vld [vmem:[%s3050_s12 + $0x20] sm:$0xff] }
 0x6bb   : > { %1277 = vmatpush.msrb.mxu3 %v1183_v7  ;;  %v1561_v7 = vld [vmem:[%s3050_s12 + $0x18] sm:$0xff] }
 0x73b   : > { %v1220_v61 = vpop.f32.mrf.mxu3 }
 0x73c   : > { %v1223_v62 = vmul.f32 0.25, %v1220_v61  ;;  %v1190_v61 = vld [vmem:[%s3048_s10 + $0x38] sm:$0xff] }
 0x73e   : > { %v1224_v63 = vadd.f32 %v1223_v62, %v2679_v18 }
 0x740   : > { %v1225_v0 = vsel %vm783_vm3, %v1224_v63, -inf }
 0x741   : > { %1226 = vmax.xlane.f32.xlu1 %v1225_v0 }
 0x7b4   : > { %v1227_v1 = vpop.xlane.xlu1 %1226 }
 0x7b5   : > { %v1228_v2 = vsub.f32 %v1224_v63, %v1227_v1 }
 0x7b7   : > { %v1229_v3 = vmul.f32 1.442695, %v1228_v2  ;;  %v1189_v2 = vld [vmem:[%s3048_s10 + $0x30] sm:$0xff] }
 0x7b9   : > { %2430 = vpow2.f32 %v1229_v3  ;;  %v1565_v3 = vld [vmem:[%s3050_s12 + $0x38] sm:$0xff] }
 0x7bf   : > { %v2431_v4 = vpop.eup %2430 }
 0x7c0   : > { %v1231_v5 = vsel %vm783_vm3, %v2431_v4, 0.0 }
 0x7c1   : > { %1232 = vadd.xlane.f32.xlu0 %v1231_v5  ;;  %v1563_v5 = vld [vmem:[%s3050_s12 + $0x28] sm:$0xff] }
 0x7d5   : > { %1377 = vrot.lane.b32.xlu0 %v1161_v57, %s3092_s27 }
 0x7dd   : > { %1468 = vrot.lane.b32.xlu0 %v1161_v57, %s2499_s0  ;;  %s2502_s0 = smov 104  }
 0x7e5   : > { %1466 = vrot.lane.b32.xlu0 %v1161_v57, %s3093_s3 }
 0x834   : > { %v1233_v10 = vpop.xlane.xlu0 %1232 }
 0x835   : > { %2432 = vrcp.f32 %v1233_v10  ;;  %v1559_v10 = vld [vmem:[%s3050_s12 + $0x8] sm:$0xff] }
 0x83b   : > { %v2433_v11 = vpop.eup %2432 }
 0x83c   : > { %v1235_v12 = vmul.f32 %v2433_v11, %v2431_v4  ;;  %v1564_v4 = vld [vmem:[%s3050_s12 + $0x30] sm:$0xff]  ;;  %v1558_v11 = vld [vmem:[%s3050_s12] sm:$0xff] }
 0x83e   : > { %2342 = vmatmul.msk.f32.vlgmr.msra.gmra.mxu2 %vm783_vm3, %v1235_v12  ;;  %v2409_v12 = vld [vmem:[%s3049_s11] ss:$0 sm:$0xff] }
 0x846   : > { %2345 = vmatmul.msk.f32.vlgmr.msrb.gmra.mxu2 %vm756_vm1, %v1284_v13 }
 0x847   : > { %v1378_v14 = vpop.permute.xlu0 %1377 }
 0x848   : > { %2348 = vmatpush.xpose.msk.msra.mxu3 %vm756_vm1, %v1378_v14 }
 0x84f   : > { %v1469_v15 = vpop.permute.xlu0 %1468 }
 0x850   : > { %2352 = vmatpush.xpose.msk.msrb.mxu1 %vm756_vm1, %v1469_v15 }
 0x857   : > { %v1467_v38 = vpop.permute.xlu0 %1466 }
 0x8c1   : > { %v1256_v16 = vpop.f32.mrf.mxu2 }
 0x8c2   : > { %2343 = vmatmul.msk.f32.vlgmr.msrb.gmra.mxu3 %vm756_vm1, %v1256_v16 }
 0x8c9   : > { %v1308_v17 = vpop.f32.mrf.mxu2 }
 0x8ca   : > { %v1311_v19 = vmul.f32 0.25, %v1308_v17 }
 0x8cc   : > { %v1312_v20 = vadd.f32 %v1311_v19, %v2679_v18 }
 0x8ce   : > { %v1313_v21 = vsel %vm783_vm3, %v1312_v20, -inf }
 0x8cf   : > { %1314 = vmax.xlane.f32.xlu1 %v1313_v21  ;;  %v2410_v21 = vld [vmem:[%s3051_s13] ss:$0 sm:$0xff] }
 0x8e8   : > { %1325 = vrot.lane.b32.xlu1 %v2805_v58, %s3091_s26 }
 0x8f0   : > { %1375 = vrot.lane.b32.xlu1 %v1161_v57, %s3094_s5 }
 0x942   : > { %v1315_v22 = vpop.xlane.xlu1 %1314 }
 0x943   : > { %v1316_v23 = vsub.f32 %v1312_v20, %v1315_v22 }
 0x945   : > { %v1317_v24 = vmul.f32 1.442695, %v1316_v23  ;;  %v2845_v32 = vpop.f32.mrf.mxu3 }
 0x946   : > { %v1282_v13 = vadd.f32 %v2409_v12, %v2845_v32 }
 0x947   : > { %2434 = vpow2.f32 %v1317_v24 }
 0x94d   : > { %v2435_v25 = vpop.eup %2434 }
 0x94e   : > { %v1319_v26 = vsel %vm783_vm3, %v2435_v25, 0.0 }
 0x94f   : > { %1320 = vadd.xlane.f32.xlu2 %v1319_v26 }
 0x95a   : > { %v1326_v27 = vpop.permute.xlu1 %1325 }
 0x95b   : > { %1346 = vmatpush.msra.mxu0 %v1326_v27 }
 0x95d   : > { %1459 = vmatpush.msrb.mxu0 %v1188_v60 }
 0x962   : > { %v1376_v28 = vpop.permute.xlu1 %1375 }
 0x963   : > { %2349 = vmatmul.msk.f32.vlgmr.msra.gmra.mxu3 %vm756_vm1, %v1376_v28 }
 0x9c2   : > { %v1321_v29 = vpop.xlane.xlu2 %1320 }
 0x9c3   : > { %2436 = vrcp.f32 %v1321_v29 }
 0x9c9   : > { %v2437_v30 = vpop.eup %2436 }
 0x9ca   : > { %v1323_v31 = vmul.f32 %v2437_v30, %v2435_v25 }
 0x9cc   : > { %2346 = vmatmul.msk.f32.vlgmr.msra.gmra.mxu0 %vm783_vm3, %v1323_v31 }
 0x9e6   : > { %v1400_v33 = vpop.f32.mrf.mxu3 }
 0x9e7   : > { %v1403_v34 = vmul.f32 0.25, %v1400_v33 }
 0x9e9   : > { %v1404_v35 = vadd.f32 %v1403_v34, %v2679_v18 }
 0x9eb   : > { %v1405_v36 = vsel %vm783_vm3, %v1404_v35, -inf }
 0x9ec   : > { %1406 = vmax.xlane.f32.xlu2 %v1405_v36 }
 0xa49   : > { %v1348_v37 = vpop.f32.mrf.mxu0 }
 0xa4a   : > { %2347 = vmatmul.msk.f32.vlgmr.msra.gmra.mxu1 %vm756_vm1, %v1348_v37 }
 0xa52   : > { %2353 = vmatmul.msk.f32.vlgmr.msrb.gmra.mxu1 %vm756_vm1, %v1467_v38 }
 0xa5f   : > { %v1407_v39 = vpop.xlane.xlu2 %1406 }
 0xa60   : > { %v1408_v40 = vsub.f32 %v1404_v35, %v1407_v39 }
 0xa62   : > { %v1409_v41 = vmul.f32 1.442695, %v1408_v40 }
 0xa64   : > { %2438 = vpow2.f32 %v1409_v41 }
 0xa6a   : > { %v2439_v42 = vpop.eup %2438 }
 0xa6b   : > { %v1411_v43 = vsel %vm783_vm3, %v2439_v42, 0.0 }
 0xa6c   : > { %1412 = vadd.xlane.f32.xlu2 %v1411_v43 }
 0xa84   : > { %1507 = vrot.lane.b32.xlu2 %v2805_v58, %s3093_s3 }
 0xac7   : > { %v1371_v44 = vpop.f32.mrf.mxu1 }
 0xac8   : > { %v1374_v15 = vadd.f32 %v1371_v44, %v1282_v13 }
 0xacf   : > { %v1491_v45 = vpop.f32.mrf.mxu1 }
 0xad0   : > { %v1494_v46 = vmul.f32 0.25, %v1491_v45 }
 0xad2   : > { %v1495_v47 = vadd.f32 %v1494_v46, %v2679_v18 }
 0xad4   : > { %v1496_v48 = vsel %vm783_vm3, %v1495_v47, -inf }
 0xad5   : > { %1497 = vmax.xlane.f32.xlu1 %v1496_v48 }
 0xadf   : > { %v1413_v49 = vpop.xlane.xlu2 %1412 }
 0xae7   : > { %v1508_v50 = vpop.permute.xlu2 %1507 }
 0xae8   : > { %1528 = vmatpush.msrb.mxu3 %v1508_v50 }
 0xaee   : > { %1416 = vrot.lane.b32.xlu1 %v2805_v58, %s3094_s5  ;;  %v1187_v58 = vld [vmem:[%s3048_s10 + $0x20] sm:$0xff] }
 0xaef   : > { %1460 = vmatpush.msrb.mxu0 %v1187_v58 }
 0xaf1   : > { %1581 = vmatpush.msra.mxu0 %v1565_v3 }
 0xaf3   : > { %1582 = vmatpush.msra.mxu0 %v1564_v4 }
 0xaf5   : > { %1583 = vmatpush.msra.mxu0 %v1563_v5  ;;  %v2411_v5 = vld [vmem:[%s3053_s15] ss:$0 sm:$0xff] }
 0xaf7   : > { %1584 = vmatpush.msra.mxu0 %v1562_v6 }
 0xaf9   : > { %1585 = vmatpush.msra.mxu0 %v1561_v7 }
 0xafb   : > { %1586 = vmatpush.msra.mxu0 %v1560_v9 }
 0xafd   : > { %1587 = vmatpush.msra.mxu0 %v1559_v10 }
 0xaff   : > { %1588 = vmatpush.msra.mxu0 %v1558_v11 }
 0xb48   : > { %v1498_v51 = vpop.xlane.xlu1 %1497 }
 0xb49   : > { %v1499_v52 = vsub.f32 %v1495_v47, %v1498_v51 }
 0xb4b   : > { %v1500_v53 = vmul.f32 1.442695, %v1499_v52 }
 0xb4d   : > { %2440 = vpow2.f32 %v1500_v53 }
 0xb4e   : > { %2442 = vrcp.f32 %v1413_v49  ;;  %v1593_v49 = vld [vmem:[%s3052_s14] sm:$0xff] }
 0xb53   : > { %v2441_v54 = vpop.eup %2440 }
 0xb54   : > { %v1502_v55 = vsel %vm783_vm3, %v2441_v54, 0.0  ;;  %v2443_v56 = vpop.eup %2442 }
 0xb55   : > { %1503 = vadd.xlane.f32.xlu0 %v1502_v55  ;;  %v1415_v57 = vmul.f32 %v2443_v56, %v2439_v42  ;;  %v1594_v56 = vld [vmem:[%s3052_s14 + $0x8] sm:$0xff] }
 0xb60   : > { %v1417_v59 = vpop.permute.xlu1 %1416 }
 0xb61   : > { %1437 = vmatpush.msra.mxu2 %v1417_v59 }
 0xb62   : > { %2350 = vmatmul.msk.f32.vlgmr.msra.gmra.mxu2 %vm783_vm3, %v1415_v57 }
 0xb63   : > { %1550 = vmatpush.msrb.mxu2 %v1190_v61 }
 0xb65   : > { %1551 = vmatpush.msrb.mxu2 %v1189_v2 }
 0xb67   : > { %1686 = vmatpush.msra.mxu2 %v1593_v49 }
 0xbc8   : > { %v1504_v62 = vpop.xlane.xlu0 %1503 }
 0xbc9   : > { %2444 = vrcp.f32 %v1504_v62 }
 0xbcf   : > { %v2445_v63 = vpop.eup %2444 }
 0xbd0   : > { %v1506_v0 = vmul.f32 %v2445_v63, %v2441_v54 }
 0xbd2   : > { %2354 = vmatmul.msk.f32.vlgmr.msrb.gmra.mxu3 %vm783_vm3, %v1506_v0 }
 0xbe5   : > { %v1439_v1 = vpop.f32.mrf.mxu2 }
 0xbe6   : > { %2351 = vmatmul.msk.f32.vlgmr.msrb.gmra.mxu0 %vm756_vm1, %v1439_v1 }
 0xc55   : > { %v1530_v8 = vpop.f32.mrf.mxu3 }
 0xc56   : > { %2355 = vmatmul.msk.f32.vlgmr.msrb.gmra.mxu2 %vm756_vm1, %v1530_v8 }
 0xc57   : > { %1777 = vmatpush.msrb.mxu2 %v1594_v56 }
 0xc63   : > { %v1462_v14 = vpop.f32.mrf.mxu0 }
 0xc64   : > { %v1465_v16 = vadd.f32 %v1462_v14, %v1374_v15 }
 0xcd9   : > { %v1553_v17 = vpop.f32.mrf.mxu2 }
 0xcda   : > { %v1556_v19 = vadd.f32 %v1553_v17, %v1465_v16 }
 0xcdc   : > { %v1557_v20 = vmax.f32 %v1556_v19, 0.0 }
 0xcde   : > { %2356 = vmatmul.msk.f32.vlgmr.msra.gmra.mxu0 %vm1139_vm4, %v1557_v20 }
 0xd5b   : > { %v1590_v22 = vpop.f32.mrf.mxu0 }
 0xd5c   : > { %v2907_v23 = vadd.f32 %v2410_v21, %v1590_v22 }
 0xd5e   : > { %1694 = vrot.lane.b32.xlu0 %v2907_v23, %s2500_s6  ;;  %1603 = vrot.lane.b32.xlu2 %v2907_v23, %s3094_s5  ;;  %s2508_s6 = smov 124  }
 0xd66   : > { %1692 = vrot.lane.b32.xlu2 %v2907_v23, %s2501_s2  ;;  %s3095_s2 = sld [smem:[#allocation4_spill]] }
 0xdb8   : > { %v1604_v24 = vpop.permute.xlu2 %1603 }
 0xdb9   : > { %2357 = vmatpush.xpose.msk.msra.mxu1 %vm783_vm3, %v1604_v24 }
 0xdbc   : > { %2358 = vmatmul.msk.f32.vlgmr.msra.gmra.mxu1 %vm783_vm3, %v2907_v23 }
 0xdc0   : > { %v1693_v26 = vpop.permute.xlu2 %1692 }
 0xdd0   : > { %v1695_v25 = vpop.permute.xlu0 %1694 }
 0xdd1   : > { %2361 = vmatpush.xpose.msk.msrb.mxu1 %vm783_vm3, %v1695_v25 }
 0xdd4   : > { %2362 = vmatmul.msk.f32.vlgmr.msrb.gmra.mxu1 %vm783_vm3, %v1693_v26 }
 0xe39   : > { %v1626_v27 = vpop.f32.mrf.mxu1 }
 0xe3a   : > { %v1629_v28 = vmul.f32 0.35355338, %v1626_v27 }
 0xe3c   : > { %v1630_v29 = vadd.f32 %v1629_v28, %v2679_v18 }
 0xe3e   : > { %v1631_v30 = vsel %vm783_vm3, %v1630_v29, -inf }
 0xe3f   : > { %1632 = vmax.xlane.f32.xlu2 %v1631_v30  ;;  %v1596_v30 = vld [vmem:[%s3052_s14 + $0x18] sm:$0xff] }
 0xe51   : > { %v1717_v31 = vpop.f32.mrf.mxu1 }
 0xe52   : > { %v1720_v32 = vmul.f32 0.35355338, %v1717_v31  ;;  %v1969_v31 = vld [vmem:[%s3054_s16 + $0x18] sm:$0xff] }
 0xe54   : > { %v1721_v33 = vadd.f32 %v1720_v32, %v2679_v18 }
 0xe56   : > { %v1722_v34 = vsel %vm783_vm3, %v1721_v33, -inf }
 0xe57   : > { %1723 = vmax.xlane.f32.xlu1 %v1722_v34  ;;  %v1967_v34 = vld [vmem:[%s3054_s16 + $0x8] sm:$0xff] }
 0xe70   : > { %1642 = vrot.lane.b32.xlu1 %v2907_v23, %s3090_s4  ;;  %s2503_s4 = smov 72  }
 0xe78   : > { %1874 = vrot.lane.b32.xlu1 %v2907_v23, %s2502_s0  ;;  %s668_s0 = scalar_lea.vmem %s3095_s2, %s2639_s29 }
 0xeb2   : > { %v1633_v35 = vpop.xlane.xlu2 %1632 }
 0xeb3   : > { %v1634_v36 = vsub.f32 %v1630_v29, %v1633_v35  ;;  %v1966_v35 = vld [vmem:[%s3054_s16] sm:$0xff] }
 0xeb5   : > { %v1635_v37 = vmul.f32 1.442695, %v1634_v36 }
 0xeb7   : > { %2446 = vpow2.f32 %v1635_v37 }
 0xebd   : > { %v2447_v38 = vpop.eup %2446 }
 0xebe   : > { %v1637_v39 = vsel %vm783_vm3, %v2447_v38, 0.0 }
 0xebf   : > { %1638 = vadd.xlane.f32.xlu0 %v1637_v39 }
 0xeca   : > { %v1724_v40 = vpop.xlane.xlu1 %1723 }
 0xecb   : > { %v1725_v41 = vsub.f32 %v1721_v33, %v1724_v40  ;;  %v1968_v33 = vld [vmem:[%s3054_s16 + $0x10] sm:$0xff] }
 0xecd   : > { %v1726_v42 = vmul.f32 1.442695, %v1725_v41  ;;  %v2412_v41 = vld [vmem:[%s3055_s17] ss:$0 sm:$0xff] }
 0xecf   : > { %2448 = vpow2.f32 %v1726_v42 }
 0xed3   : > { %1785 = vrot.lane.b32.xlu0 %v2907_v23, %s3093_s3 }
 0xed5   : > { %v2449_v43 = vpop.eup %2448 }
 0xed6   : > { %v1728_v44 = vsel %vm783_vm3, %v2449_v43, 0.0 }
 0xed7   : > { %1729 = vadd.xlane.f32.xlu2 %v1728_v44 }
 0xedb   : > { %1876 = vrot.lane.b32.xlu0 %v2907_v23, %s2503_s4 }
 0xee2   : > { %v1643_v45 = vpop.permute.xlu1 %1642 }
 0xee3   : > { %1663 = vmatpush.msra.mxu3 %v1643_v45 }
 0xeea   : > { %v1875_v0 = vpop.permute.xlu1 %1874 }
 0xeef   : > { %1733 = vrot.lane.b32.xlu2 %v2907_v23, %s2504_s30 }
 0xef7   : > { %1783 = vrot.lane.b32.xlu2 %v2907_v23, %s3091_s26  ;;  %s3096_s26 = sld [smem:[#allocation5_spill]] }
 0xefd   : > { %s672_s8 = scalar_lea.vmem %s3096_s26, %s2639_s29  ;;  %s2509_s29 = smov 60  }
 0xf32   : > { %v1639_v46 = vpop.xlane.xlu0 %1638 }
 0xf33   : > { %2450 = vrcp.f32 %v1639_v46 }
 0xf39   : > { %v2451_v47 = vpop.eup %2450 }
 0xf3a   : > { %v1641_v48 = vmul.f32 %v2451_v47, %v2447_v38 }
 0xf3c   : > { %2359 = vmatmul.msk.f32.vlgmr.msra.gmra.mxu3 %vm783_vm3, %v1641_v48 }
 0xf45   : > { %v1786_v50 = vpop.permute.xlu0 %1785 }
 0xf46   : > { %2365 = vmatpush.xpose.msk.msrb.mxu0 %vm783_vm3, %v1786_v50 }
 0xf4a   : > { %v1730_v51 = vpop.xlane.xlu2 %1729 }
 0xf4b   : > { %2452 = vrcp.f32 %v1730_v51 }
 0xf4d   : > { %v1877_v59 = vpop.permute.xlu0 %1876 }
 0xf51   : > { %v2453_v52 = vpop.eup %2452 }
 0xf52   : > { %v1732_v53 = vmul.f32 %v2453_v52, %v2449_v43  ;;  %v1734_v54 = vpop.permute.xlu2 %1733  ;;  %v2022_v43 = vld [vmem:[%s668_s0] sm:$0xff] }
 0xf53   : > { %1754 = vmatpush.msrb.mxu3 %v1734_v54  ;;  %v2048_v52 = vld [vmem:[%s3056_s18] sm:$0xf] }
 0xf54   : > { %2363 = vmatmul.msk.f32.vlgmr.msrb.gmra.mxu3 %vm783_vm3, %v1732_v53 }
 0xf5a   : > { %v1784_v55 = vpop.permute.xlu2 %1783 }
 0xf5b   : > { %2366 = vmatmul.msk.f32.vlgmr.msrb.gmra.mxu0 %vm783_vm3, %v1784_v55 }
 0xfbf   : > { %v1665_v57 = vpop.f32.mrf.mxu3 }
 0xfc0   : > { %2360 = vmatmul.msk.f32.vlgmr.msra.gmra.mxu2 %vm783_vm3, %v1665_v57 }
 0xfc1   : > { %2369 = vmatpush.xpose.msk.msra.mxu2 %vm783_vm3, %v1877_v59 }
 0xfd7   : > { %v1756_v60 = vpop.f32.mrf.mxu3 }
 0xfd8   : > { %2364 = vmatmul.msk.f32.vlgmr.msrb.gmra.mxu2 %vm783_vm3, %v1756_v60  ;;  %v1808_v58 = vpop.f32.mrf.mxu0 }
 0xfd9   : > { %v1811_v61 = vmul.f32 0.35355338, %v1808_v58  ;;  %2374 = vmatpush.msk.msrb.mxu2 %vm2056_vm6, %v2048_v52 }
 0xfdb   : > { %v1812_v62 = vadd.f32 %v1811_v61, %v2679_v18 }
 0xfdd   : > { %v1813_v63 = vsel %vm783_vm3, %v1812_v62, -inf }
 0xfde   : > { %1814 = vmax.xlane.f32.xlu0 %v1813_v63 }
 0xfe0   : > { %2370 = vmatmul.msk.f32.vlgmr.msra.gmra.mxu2 %vm783_vm3, %v1875_v0 }
0x1043   : > { %v1688_v3 = vpop.f32.mrf.mxu2 }
0x1044   : > { %v1691_v6 = vadd.f32 %v2411_v5, %v1688_v3 }
0x1051   : > { %v1815_v1 = vpop.xlane.xlu0 %1814 }
0x1052   : > { %v1816_v2 = vsub.f32 %v1812_v62, %v1815_v1  ;;  %v2103_v1 = vld [vmem:[%s672_s8] sm:$0xff] }
0x1054   : > { %v1817_v4 = vmul.f32 1.442695, %v1816_v2  ;;  %v2413_v2 = vld [vmem:[%s3057_s19] ss:$0 sm:$0xff] }
0x1056   : > { %2454 = vpow2.f32 %v1817_v4 }
0x105b   : > { %v1779_v7 = vpop.f32.mrf.mxu2 }
0x105c   : > { %v2455_v8 = vpop.eup %2454  ;;  %v1782_v9 = vadd.f32 %v1779_v7, %v1691_v6 }
0x105d   : > { %v1819_v10 = vsel %vm783_vm3, %v2455_v8, 0.0 }
0x105e   : > { %1820 = vadd.xlane.f32.xlu1 %v1819_v10 }
0x1063   : > { %v1899_v11 = vpop.f32.mrf.mxu2 }
0x1064   : > { %v1902_v12 = vmul.f32 0.35355338, %v1899_v11 }
0x1066   : > { %v1903_v13 = vadd.f32 %v1902_v12, %v2679_v18 }
0x1068   : > { %v1904_v14 = vsel %vm783_vm3, %v1903_v13, -inf }
0x1069   : > { %1905 = vmax.xlane.f32.xlu2 %v1904_v14 }
0x1077   : > { %1915 = vrot.lane.b32.xlu1 %v2907_v23, %s2505_s24 }
0x1081   : > { %1824 = vrot.lane.b32.xlu2 %v2907_v23, %s3089_s28  ;;  %v1595_v23 = vld [vmem:[%s3052_s14 + $0x10] sm:$0xff]  ;;  %s2507_s28 = smov 4  }
0x1082   : > { %1868 = vmatpush.msra.mxu3 %v1595_v23 }
0x1084   : > { %1989 = vmatpush.msrb.mxu3 %v1969_v31 }
0x1086   : > { %1990 = vmatpush.msrb.mxu3 %v1968_v33 }
0x1088   : > { %1991 = vmatpush.msrb.mxu3 %v1967_v34 }
0x1089   : > { %2117 = vrot.lane.b32.xlu2 %v2103_v1, %s2506_s21 }
0x108a   : > { %1992 = vmatpush.msrb.mxu3 %v1966_v35 }
0x10d1   : > { %v1821_v15 = vpop.xlane.xlu1 %1820 }
0x10d2   : > { %2456 = vrcp.f32 %v1821_v15 }
0x10d8   : > { %v2457_v20 = vpop.eup %2456 }
0x10d9   : > { %v1823_v21 = vmul.f32 %v2457_v20, %v2455_v8 }
0x10dc   : > { %v1906_v16 = vpop.xlane.xlu2 %1905 }
0x10dd   : > { %v1907_v17 = vsub.f32 %v1903_v13, %v1906_v16 }
0x10df   : > { %v1908_v19 = vmul.f32 1.442695, %v1907_v17 }
0x10e1   : > { %2458 = vpow2.f32 %v1908_v19 }
0x10e4   : > { %v1825_v22 = vpop.permute.xlu2 %1824 }
0x10e5   : > { %1845 = vmatpush.msra.mxu1 %v1825_v22 }
0x10e6   : > { %2367 = vmatmul.msk.f32.vlgmr.msra.gmra.mxu1 %vm783_vm3, %v1823_v21 }
0x10e7   : > { %v2459_v18 = vpop.eup %2458  ;;  %1959 = vmatpush.msrb.mxu1 %v1596_v30 }
0x10e8   : > { %v1910_v24 = vsel %vm783_vm3, %v2459_v18, 0.0 }
0x10e9   : > { %v1916_v25 = vpop.permute.xlu1 %1915  ;;  %1911 = vadd.xlane.f32.xlu0 %v1910_v24 }
0x10ea   : > { %1936 = vmatpush.msra.mxu0 %v1916_v25 }
0x10ec   : > { %v2118_v33 = vpop.permute.xlu2 %2117 }
0x115c   : > { %v1912_v26 = vpop.xlane.xlu0 %1911 }
0x115d   : > { %2460 = vrcp.f32 %v1912_v26 }
0x1163   : > { %v2461_v27 = vpop.eup %2460  ;;  %v1847_v28 = vpop.f32.mrf.mxu1 }
0x1164   : > { %v1914_v29 = vmul.f32 %v2461_v27, %v2459_v18  ;;  %2368 = vmatmul.msk.f32.vlgmr.msra.gmra.mxu3 %vm783_vm3, %v1847_v28 }
0x1166   : > { %2371 = vmatmul.msk.f32.vlgmr.msra.gmra.mxu0 %vm783_vm3, %v1914_v29 }
0x11e3   : > { %v1938_v32 = vpop.f32.mrf.mxu0 }
0x11e4   : > { %2372 = vmatmul.msk.f32.vlgmr.msrb.gmra.mxu1 %vm783_vm3, %v1938_v32 }
0x11e7   : > { %v1870_v36 = vpop.f32.mrf.mxu3 }
0x11e8   : > { %v1873_v37 = vadd.f32 %v1870_v36, %v1782_v9 }
0x1261   : > { %v1961_v38 = vpop.f32.mrf.mxu1 }
0x1262   : > { %v1964_v39 = vadd.f32 %v1961_v38, %v1873_v37 }
0x1264   : > { %v1965_v40 = vmax.f32 %v1964_v39, 0.0 }
0x1266   : > { %2373 = vmatmul.msk.f32.vlgmr.msrb.gmra.mxu3 %vm696_vm0, %v1965_v40 }
0x12e9   : > { %v1994_v42 = vpop.f32.mrf.mxu3 }
0x12ea   : > { %v2990_v44 = vadd.f32 %v2412_v41, %v1994_v42 }
0x12ec   : > { %v2023_v45 = vadd.f32 %v2022_v43, %v2990_v44  ;;  %v1998_v37 = vsel %vm1997_vm5, %v2990_v44, -inf }
0x12ee   : > { %v2024_v46 = vsel %vm1997_vm5, %v2023_v45, -inf }
0x12ef   : > { %2025 = vmax.xlane.f32.xlu0 %v2024_v46 }
0x1362   : > { %v2026_v47 = vpop.xlane.xlu0 %2025 }
0x1363   : > { %v2027_v48 = vsub.f32 %v2023_v45, %v2026_v47 }
0x1365   : > { %v2028_v49 = vmul.f32 1.442695, %v2027_v48 }
0x1367   : > { %2462 = vpow2.f32 %v2028_v49 }
0x136d   : > { %v2463_v50 = vpop.eup %2462 }
0x136e   : > { %v2030_v51 = vsel %vm1997_vm5, %v2463_v50, 0.0 }
0x136f   : > { %2031 = vadd.xlane.f32.xlu0 %v2030_v51 }
0x13e2   : > { %v2032_v53 = vpop.xlane.xlu0 %2031 }
0x13e3   : > { %2464 = vrcp.f32 %v2032_v53  ;;  %v2044_v57 = vand.u32 2147483648, %v2032_v53  ;;  %v2042_v60 = vand.u32 2147483647, %v2032_v53  ;;  %vm2038_vm8 = vweird.f32 %v2032_v53 }
0x13e5   : > { %v2045_v61 = vor.u32 1.1754944e-38, %v2044_v57  ;;  %vm2043_vm10 = vcmp.eq.f32.partialorder %v2042_v60, 8.507059e+37 }
0x13e9   : > { %v2465_v54 = vpop.eup %2464 }
0x13ea   : > { %v2034_v55 = vmul.f32 %v2465_v54, %v2032_v53  ;;  %vm2039_vm7 = vweird.f32 %v2465_v54 }
0x13eb   : > { %vm2040_vm9 = vmor %vm2038_vm8, %vm2039_vm7  ;;  %vm2208_vm7 = vcmask 293888   ;;  %vm2210_vm8 = vcmask 326656  }
0x13ec   : > { %v2035_v56 = vsub.f32 1.0, %v2034_v55 }
0x13ee   : > { %v2036_v59 = vmul.f32 %v2465_v54, %v2035_v56 }
0x13f0   : > { %v2037_v58 = vadd.f32 %v2465_v54, %v2036_v59 }
0x13f2   : > { %v2041_v62 = vsel %vm2040_vm9, %v2465_v54, %v2037_v58  ;;  %vm2212_vm9 = vcmask 359424  }
0x13f3   : > { %v2046_v63 = vsel %vm2043_vm10, %v2045_v61, %v2041_v62  ;;  %vm2214_vm10 = vcmask 424960  }
0x13f4   : > { %v2047_v0 = vmul.f32 %v2463_v50, %v2046_v63 }
0x13f6   : > { %2375 = vmatmul.msk.f32.vlgmr.msrb.gmra.mxu2 %vm1997_vm5, %v2047_v0 }
0x1479   : > { %v2077_v3 = vpop.f32.mrf.mxu2 }
0x147a   : > { %v2078_v4 = vadd.f32 %v2413_v2, %v2077_v3 }
0x147c   : > { %2081 = vrot.lane.b32.xlu0 %v2078_v4, %s2507_s28  ;;  %v2095_v8 = vand.u32 2147483647, %v2078_v4  ;;  %v2094_v27 = vmax.f32 %v2078_v4, 0.0 }
0x147e   : > { %v2096_v11 = vsub.f32 0.0, %v2095_v8 }
0x1480   : > { %v2097_v12 = vmul.f32 1.442695, %v2096_v11 }
0x14ee   : > { %v2082_v5 = vpop.permute.xlu0 %2081 }
0x14ef   : > { %v2084_v6 = vadd.f32 %v2082_v5, %v2990_v44 }
0x14f1   : > { %v2086_v7 = vand.u32 2147483647, %v2084_v6  ;;  %2171 = vrot.lane.b32.xlu0 %v2084_v6, %s2508_s6  ;;  %v2085_v17 = vmax.f32 %v2084_v6, 0.0 }
0x14f3   : > { %v2087_v9 = vsub.f32 0.0, %v2086_v7 }
0x14f5   : > { %v2088_v10 = vmul.f32 1.442695, %v2087_v9 }
0x14f7   : > { %2466 = vpow2.f32 %v2088_v10 }
0x14f8   : > { %2468 = vpow2.f32 %v2097_v12 }
0x14fd   : > { %v2467_v13 = vpop.eup %2466 }
0x14fe   : > { %v2090_v14 = vadd.f32 1.0, %v2467_v13  ;;  %v2469_v15 = vpop.eup %2468 }
0x14ff   : > { %v2099_v20 = vadd.f32 1.0, %v2469_v15 }
0x1500   : > { %2470 = vlog2.f32 %v2090_v14 }
0x1506   : > { %v2471_v16 = vpop.eup %2470 }
0x1507   : > { %v2092_v19 = vmul.f32 0.6931472, %v2471_v16 }
0x1509   : > { %v2093_v21 = vadd.f32 %v2092_v19, %v2085_v17 }
0x150b   : > { %2175 = vrot.lane.b32.xlu0 %v2093_v21, %s2508_s6  ;;  %2472 = vrsqrt.f32 %v2093_v21  ;;  %vm2111_vm11 = vcmp.eq.f32.partialorder %v2093_v21, inf  ;;  %v2114_v32 = vand.u32 2147483648, %v2093_v21  ;;  %vm2113_vm12 = vcmp.eq.f32.partialorder %v2093_v21, 0.0 }
0x150c   : > { %2474 = vlog2.f32 %v2099_v20 }
0x1511   : > { %v2473_v22 = vpop.eup %2472 }
0x1512   : > { %v2475_v18 = vpop.eup %2474  ;;  %v2105_v24 = vmul.f32 %v2473_v22, %v2093_v21 }
0x1513   : > { %2181 = vrot.lane.b32.xlu0 %v2078_v4, %s3092_s27  ;;  %v2101_v23 = vmul.f32 0.6931472, %v2475_v18 }
0x1514   : > { %v2106_v25 = vmul.f32 %v2473_v22, %v2105_v24 }
0x1515   : > { %v2102_v29 = vadd.f32 %v2101_v23, %v2094_v27 }
0x1516   : > { %v2107_v26 = vmul.f32 0.5, %v2106_v25 }
0x1518   : > { %v2108_v28 = vsub.f32 1.5, %v2107_v26 }
0x151a   : > { %v2109_v30 = vmul.f32 %v2473_v22, %v2108_v28 }
0x151b   : > { %2185 = vrot.lane.b32.xlu0 %v2102_v29, %s3092_s27 }
0x151c   : > { %v2110_v31 = vmul.f32 %v2109_v30, %v2093_v21 }
0x151e   : > { %v2112_v34 = vsel %vm2111_vm11, %v2093_v21, %v2110_v31 }
0x151f   : > { %v2115_v35 = vsel %vm2113_vm12, %v2114_v32, %v2112_v34 }
0x1520   : > { %v2120_v36 = vmul.f32 %v2118_v33, %v2115_v35 }
0x1522   : > { %2122 = vrot.lane.b32.xlu1 %v2120_v36, %s3094_s5 }
0x1523   : > { %2196 = vrot.lane.b32.xlu0 %v2047_v0, %s2505_s24 }
0x154c   : > { %1999 = vmax.xlane.f32.xlu1 %v1998_v37 }
0x1563   : > { %v2172_v46 = vpop.permute.xlu0 %2171 }
0x1565   : > { %2189 = vrot.lane.b32.xlu1 %v2990_v44, %s3092_s27  ;;  %s2380_s27 = sshll.u32 %s3098_s22, 4  ;;  %s2510_s22 = smov 44  }
0x1566   : > { %s3028_s2 = scalar_lea.vmem %s3058_s20, %s2380_s27 }
0x157d   : > { %v2176_v47 = vpop.permute.xlu0 %2175 }
0x1585   : > { %v2182_v48 = vpop.permute.xlu0 %2181 }
0x158d   : > { %v2186_v50 = vpop.permute.xlu0 %2185 }
0x1594   : > { %v2123_v38 = vpop.permute.xlu1 %2122 }
0x1595   : > { %v2125_v39 = vadd.f32 %v2123_v38, %v2084_v6  ;;  %v2197_v51 = vpop.permute.xlu0 %2196 }
0x1597   : > { %2178 = vrot.lane.b32.xlu0 %v2125_v39, %s2509_s29  ;;  %2127 = vrot.lane.b32.xlu2 %v2125_v39, %s2508_s6 }
0x15bf   : > { %v2000_v40 = vpop.xlane.xlu1 %1999 }
0x15c0   : > { %v2001_v41 = vsub.f32 %v2990_v44, %v2000_v40  ;;  %v2203_v44 = vsel %vm696_vm0, %v2172_v46, %v2176_v47 }
0x15c2   : > { %v2002_v42 = vmul.f32 1.442695, %v2001_v41 }
0x15c4   : > { %2476 = vpow2.f32 %v2002_v42 }
0x15ca   : > { %v2477_v43 = vpop.eup %2476 }
0x15cb   : > { %v2004_v45 = vsel %vm1997_vm5, %v2477_v43, 0.0 }
0x15cc   : > { %2005 = vadd.xlane.f32.xlu2 %v2004_v45 }
0x15d7   : > { %v2190_v19 = vpop.permute.xlu1 %2189 }
0x15d8   : > { %v2207_v21 = vsel %vm696_vm0, %v2186_v50, %v2190_v19 }
0x15f1   : > { %v2128_v49 = vpop.permute.xlu2 %2127 }
0x15f2   : > { %2376 = vmatpush.xpose.msk.msrb.mxu0 %vm696_vm0, %v2128_v49 }
0x15f5   : > { %2377 = vmatmul.msk.f32.vlgmr.msrb.gmra.mxu0 %vm696_vm0, %v2128_v49 }
0x1609   : > { %v2179_v52 = vpop.permute.xlu0 %2178 }
0x160a   : > { %v2204_v53 = vsel %vm1139_vm4, %v2203_v44, %v2179_v52 }
0x160b   : > { %v2206_v54 = vsel %vm2205_vm13, %v2204_v53, %v2182_v48 }
0x160c   : > { %2216 = vst [vmem:[%s3028_s2] sm:$0xff] %v2206_v54 }
0x163f   : > { %v2006_v55 = vpop.xlane.xlu2 %2005 }
0x1640   : > { %2478 = vrcp.f32 %v2006_v55  ;;  %v2018_v60 = vand.u32 2147483648, %v2006_v55  ;;  %v2016_v61 = vand.u32 2147483647, %v2006_v55  ;;  %vm2012_vm15 = vweird.f32 %v2006_v55 }
0x1642   : > { %v2019_v63 = vor.u32 1.1754944e-38, %v2018_v60  ;;  %vm2017_vm2 = vcmp.eq.f32.partialorder %v2016_v61, 8.507059e+37 }
0x1646   : > { %v2479_v56 = vpop.eup %2478 }
0x1647   : > { %v2008_v57 = vmul.f32 %v2479_v56, %v2006_v55  ;;  %vm2013_vm14 = vweird.f32 %v2479_v56 }
0x1648   : > { %vm2014_vm1 = vmor %vm2012_vm15, %vm2013_vm14 }
0x1649   : > { %v2009_v59 = vsub.f32 1.0, %v2008_v57 }
0x164b   : > { %v2010_v58 = vmul.f32 %v2479_v56, %v2009_v59 }
0x164d   : > { %v2011_v62 = vadd.f32 %v2479_v56, %v2010_v58 }
0x164f   : > { %v2015_v0 = vsel %vm2014_vm1, %v2479_v56, %v2011_v62 }
0x1650   : > { %v2020_v1 = vsel %vm2017_vm2, %v2019_v63, %v2015_v0 }
0x1651   : > { %v2021_v2 = vmul.f32 %v2477_v43, %v2020_v1 }
0x1653   : > { %2193 = vrot.lane.b32.xlu2 %v2021_v2, %s2506_s21 }
0x1672   : > { %v2148_v3 = vpop.f32.mrf.mxu0 }
0x1673   : > { %v2151_v4 = vsub.f32 0.0, %v2148_v3 }
0x1675   : > { %v2152_v5 = vmul.f32 1.442695, %v2151_v4 }
0x1677   : > { %2480 = vpow2.f32 %v2152_v5 }
0x167d   : > { %v2481_v6 = vpop.eup %2480 }
0x167e   : > { %v2154_v7 = vadd.f32 1.0, %v2481_v6 }
0x1680   : > { %2482 = vrcp.f32 %v2154_v7  ;;  %v2166_v11 = vand.u32 2147483648, %v2154_v7  ;;  %v2164_v13 = vand.u32 2147483647, %v2154_v7  ;;  %vm2160_vm4 = vweird.f32 %v2154_v7 }
0x1682   : > { %v2167_v15 = vor.u32 1.1754944e-38, %v2166_v11  ;;  %vm2165_vm6 = vcmp.eq.f32.partialorder %v2164_v13, 8.507059e+37 }
0x1686   : > { %v2483_v8 = vpop.eup %2482 }
0x1687   : > { %v2156_v9 = vmul.f32 %v2483_v8, %v2154_v7  ;;  %vm2161_vm3 = vweird.f32 %v2483_v8 }
0x1688   : > { %vm2162_vm5 = vmor %vm2160_vm4, %vm2161_vm3 }
0x1689   : > { %v2157_v10 = vsub.f32 1.0, %v2156_v9 }
0x168b   : > { %v2158_v12 = vmul.f32 %v2483_v8, %v2157_v10 }
0x168d   : > { %v2159_v14 = vadd.f32 %v2483_v8, %v2158_v12 }
0x168f   : > { %v2163_v16 = vsel %vm2162_vm5, %v2483_v8, %v2159_v14 }
0x1690   : > { %v2168_v17 = vsel %vm2165_vm6, %v2167_v15, %v2163_v16 }
0x1691   : > { %2200 = vrot.lane.b32.xlu0 %v2168_v17, %s2510_s22 }
0x16ad   : > { %v2194_v20 = vpop.permute.xlu2 %2193 }
0x16ae   : > { %v2209_v22 = vsel %vm2208_vm7, %v2207_v21, %v2194_v20 }
0x16af   : > { %v2211_v24 = vsel %vm2210_vm8, %v2209_v22, %v2197_v51 }
0x1703   : > { %v2201_v18 = vpop.permute.xlu0 %2200 }
0x1704   : > { %v2213_v25 = vsel %vm2212_vm9, %v2211_v24, %v2201_v18 }
0x1705   : > { %v2215_v23 = vsel %vm2214_vm10, %v2213_v25, 0.0 }
0x1706   : > { %2217 = vst [vmem:[%s3028_s2 + $0x8] sm:$0xff] %v2215_v23 }
0x1707 PF: > { %s30_s1 = sadd.s32 1, %s2490_s1  }
0x1708   : > { %p27_p4 = scmp.ge.s32.totalorder %s30_s1, 4  }
0x170a   :  { %29 = sbr.rel (!%p27_p4) target bundleno = 10 (0xa), region = 139 }

</bundles_post_ra>
